<compile_context>
chip_gen: v5e
topology: v5e:2x2
jax: 0.10.0
libtpu: 0.0.40
codegen_flags: <defaults>
</compile_context>

<pallas_src>
import functools
from typing import Dict

import jax
import jax.numpy as jnp
from jax.experimental import pallas as pl
from jax.experimental.pallas import tpu as pltpu

LANE = 128
SUBLANE = 8

NUMERIC_NAMES = ['CreditScore', 'MonthlyCost', 'OfferedAmount',
                 'case:RequestedAmount', 'FirstWithdrawalAmount']


def _round_up(x: int, m: int) -> int:
    return (x + m - 1) // m * m


# ----------------------------- Pallas kernel -------------------------------


def make_lstm_kernel(num_layers: int, hidden: int, seq_len: int, batch_tile: int):
    """Eval-mode multi-layer LSTM + FC + sigmoid, layer-wavefront recurrence.

    Kernel ref order:
      x      [S*Bt, D_pad] bf16   (time-major rows within the batch tile: row = t*Bt + b),
      lens   [Bt, 1] int32        (valid length per batch row; 0 for padding rows),
      w_ih0  [D_pad, 4H] bf16     (layer-0 input weight, g-gate cols pre-scaled by 2),
      w_rec  [L*H, L*4H] bf16     (banded: diag = w_hh_l, super-diag = w_ih_l for l>=1),
      b_rec  [1, L*4H] f32        (all layers' biases, g-gate cols pre-scaled by 2),
      fc_w   [H, C_pad] bf16, fc_b [1, C_pad] f32,
      out    [Bt, C_pad] f32      (output)
    """
    S, Bt, H, L = seq_len, batch_tile, hidden, num_layers
    G = 4 * H

    def kernel(x_ref, len_ref, w_ih0_ref, w_rec_ref, b_rec_ref,
               fc_w_ref, fc_b_ref, out_ref):
        # ---- loop-invariant loads (hoisted out of the recurrence) ----
        lens_m1 = len_ref[...] - 1                    # [Bt, 1] int32
        w_rec = w_rec_ref[...]                        # [L*H, L*G] bf16
        b_rec = b_rec_ref[...]                        # [1, L*G]   f32

        # ---- layer-0 whole-sequence input projection: ONE MXU matmul ----
        precomp0 = jnp.dot(x_ref[...], w_ih0_ref[...],
                           preferred_element_type=jnp.float32)    # [S*Bt, G] f32

        h = [jnp.zeros((Bt, H), jnp.bfloat16) for _ in range(L)]
        c = [jnp.zeros((Bt, H), jnp.float32) for _ in range(L)]
        last = jnp.zeros((Bt, H), jnp.bfloat16)

        def cell(gates, c_prev):
            # g-gate columns were pre-scaled by 2 in the wrapper, so a single
            # full-tile sigmoid covers i, f, o and tanh via tanh(x)=2*sigmoid(2x)-1.
            sig = jax.nn.sigmoid(gates)               # EUP pass 1 on [Bt, 4H]
            i_g = sig[:, 0 * H:1 * H]
            f_g = sig[:, 1 * H:2 * H]
            g_g = 2.0 * sig[:, 2 * H:3 * H] - 1.0
            o_g = sig[:, 3 * H:4 * H]
            c_new = f_g * c_prev + i_g * g_g
            h_new = (o_g * jnp.tanh(c_new)).astype(jnp.bfloat16)  # EUP pass 2
            return h_new, c_new

        # ---- layer wavefront: slot w runs layer l at step t = w - l ----
        # Fully unrolled (S + L - 1 slots; S and L are static and small).
        # TODO(synk): for large S switch to lax.fori_loop(..., unroll=4) to cap
        # vreg live ranges and compile time.
        for w in range(S + L - 1):
            # All layers' gate increments for this slot in ONE fused matmul:
            # lhs holds every layer's previous hidden; rhs is the banded weight.
            lhs = jnp.concatenate(h, axis=1)          # [Bt, L*H] bf16
            mm = jnp.dot(lhs, w_rec,
                         preferred_element_type=jnp.float32) + b_rec  # [Bt, L*G]
            new_h, new_c = list(h), list(c)
            for l in range(L):
                t = w - l
                if t < 0 or t >= S:
                    continue
                gates = mm[:, l * G:(l + 1) * G]
                if l == 0:
                    gates = gates + precomp0[t * Bt:(t + 1) * Bt, :]
                h_l, c_l = cell(gates, c[l])
                new_h[l], new_c[l] = h_l, c_l
                if l == L - 1:
                    # output[b, lengths[b]-1] selection (top-layer hidden).
                    # TODO(synk): a length-0 sample keeps last == 0 here, whereas
                    # PyTorch indexing with length-1 == -1 would wrap to step S-1.
                    last = jnp.where(lens_m1 == t, h_l, last)
            h, c = new_h, new_c

        logits = jnp.dot(last, fc_w_ref[...],
                         preferred_element_type=jnp.float32) + fc_b_ref[...]
        out_ref[...] = jax.nn.sigmoid(logits)

    return kernel


# ------------------------------ JAX wrapper ---------------------------------


def init_params(key, vocab_sizes: Dict[str, int], hidden: int,
                num_layers: int, num_classes: int) -> Dict:
    """Deterministic parameter init mirroring the nn.Module shapes."""
    n_cat = len(vocab_sizes)
    d_in = hidden * n_cat + len(NUMERIC_NAMES)
    params = {'emb': {}, 'w_ih': [], 'w_hh': [], 'b': []}

    keys = jax.random.split(key, 2 * len(vocab_sizes) + 4 * num_layers + 2)
    k = 0
    for name, vsz in vocab_sizes.items():
        tbl = 0.1 * jax.random.normal(keys[k], (vsz + 1, hidden), jnp.float32)
        k += 1
        tbl = tbl.at[0].set(0.0)  # padding_idx=0
        params['emb'][name] = tbl

    in_dim = d_in
    for _ in range(num_layers):
        w_ih = 0.1 * jax.random.normal(keys[k], (in_dim, 4 * hidden), jnp.float32); k += 1
        w_hh = 0.1 * jax.random.normal(keys[k], (hidden, 4 * hidden), jnp.float32); k += 1
        b_ih = 0.1 * jax.random.normal(keys[k], (1, 4 * hidden), jnp.float32); k += 1
        b_hh = 0.1 * jax.random.normal(keys[k], (1, 4 * hidden), jnp.float32); k += 1
        params['w_ih'].append(w_ih)
        params['w_hh'].append(w_hh)
        params['b'].append(b_ih + b_hh)  # PyTorch adds both biases
        in_dim = hidden

    params['fc_w'] = 0.1 * jax.random.normal(keys[k], (hidden, num_classes), jnp.float32); k += 1
    params['fc_b'] = 0.1 * jax.random.normal(keys[k], (1, num_classes), jnp.float32); k += 1
    return params


def _scale_g_gate(w, hidden):
    """Pre-scale the g-gate columns by 2 so tanh(x) = 2*sigmoid(2x) - 1 in-kernel."""
    return w.at[..., 2 * hidden:3 * hidden].multiply(2.0)


def _build_features(x, params, *, feature_names, emb_names, seq_len):
    """_get_embeddings equivalent (plain-JAX glue) + PyTorch length rule."""
    emb_list = []
    for name in emb_names:
        start = feature_names.index(name) * seq_len
        ids = x[:, start:start + seq_len].astype(jnp.int32)          # [B, S]
        emb_list.append(jnp.take(params['emb'][name], ids, axis=0))  # [B, S, H]
    num_list = []
    for name in NUMERIC_NAMES:
        start = feature_names.index(name) * seq_len
        num_list.append(x[:, start:start + seq_len])                 # [B, S]
    numerical = jnp.stack(num_list, axis=2)                          # [B, S, 5]
    cat = jnp.concatenate(emb_list + [numerical], axis=2)            # [B, S, D_in]
    lengths = (x[:, :seq_len] != 0).sum(axis=1).astype(jnp.int32)    # [B]
    return cat, lengths


@functools.partial(jax.jit, static_argnames=(
    'feature_names', 'emb_names', 'seq_len', 'hidden', 'num_layers', 'num_classes'))
def lstm_model_forward(x, params, *, feature_names, emb_names, seq_len,
                       hidden, num_layers, num_classes):
    B = x.shape[0]
    H = hidden
    G = 4 * H

    cat, lengths = _build_features(x, params, feature_names=feature_names,
                                   emb_names=emb_names, seq_len=seq_len)
    cat = cat.astype(jnp.bfloat16)       # cast BEFORE transpose/pad (half the bytes)
    d_in = cat.shape[-1]

    # --- dense (8,128) tiles; batch tile sized so M = S*Bt fills MXU rows ---
    bt = 8 if B <= 8 else 32
    b_pad = _round_up(B, bt)
    n_tiles = b_pad // bt
    d_pad = _round_up(d_in, LANE)
    c_pad = _round_up(num_classes, LANE)

    x_seq = jnp.transpose(cat, (1, 0, 2))                            # [S, B, D]
    x_seq = jnp.pad(x_seq, ((0, 0), (0, b_pad - B), (0, d_pad - d_in)))
    # Rearrange to tile-major rows: (tile, t, b_in_tile) so each grid step gets a
    # contiguous [S*bt, D] block (time-major within the tile).
    x_flat = jnp.transpose(x_seq.reshape(seq_len, n_tiles, bt, d_pad),
                           (1, 0, 2, 3)).reshape(n_tiles * seq_len * bt, d_pad)

    lens = jnp.pad(lengths, (0, b_pad - B))[:, None]                 # [Bp, 1]

    # Layer-0 input weight (g-gate columns pre-scaled), padded to d_pad rows.
    w_ih0 = _scale_g_gate(params['w_ih'][0], H)
    w_ih0 = jnp.pad(w_ih0, ((0, d_pad - w_ih0.shape[0]), (0, 0))).astype(jnp.bfloat16)

    # Banded recurrent weight: diagonal blocks = w_hh_l; super-diagonal = w_ih_l.
    w_rec = jnp.zeros((num_layers * H, num_layers * G), jnp.float32)
    for l in range(num_layers):
        w_rec = w_rec.at[l * H:(l + 1) * H, l * G:(l + 1) * G].set(
            _scale_g_gate(params['w_hh'][l], H))
        if l >= 1:
            w_rec = w_rec.at[(l - 1) * H:l * H, l * G:(l + 1) * G].set(
                _scale_g_gate(params['w_ih'][l], H))
    w_rec = w_rec.astype(jnp.bfloat16)
    b_rec = jnp.concatenate(
        [_scale_g_gate(params['b'][l], H) for l in range(num_layers)], axis=1)

    fc_w = jnp.pad(params['fc_w'],
                   ((0, 0), (0, c_pad - num_classes))).astype(jnp.bfloat16)
    fc_b = jnp.pad(params['fc_b'], ((0, 0), (0, c_pad - num_classes)))

    kernel = make_lstm_kernel(num_layers, H, seq_len, bt)
    out = pl.pallas_call(
        kernel,
        out_shape=jax.ShapeDtypeStruct((b_pad, c_pad), jnp.float32),
        grid_spec=pltpu.PrefetchScalarGridSpec(
            num_scalar_prefetch=0,
            grid=(n_tiles,),
            in_specs=[
                pl.BlockSpec((seq_len * bt, d_pad), lambda i: (i, 0)),
                pl.BlockSpec((bt, 1), lambda i: (i, 0)),
                pl.BlockSpec((d_pad, G), lambda i: (0, 0)),
                pl.BlockSpec((num_layers * H, num_layers * G), lambda i: (0, 0)),
                pl.BlockSpec((1, num_layers * G), lambda i: (0, 0)),
                pl.BlockSpec((H, c_pad), lambda i: (0, 0)),
                pl.BlockSpec((1, c_pad), lambda i: (0, 0)),
            ],
            out_specs=pl.BlockSpec((bt, c_pad), lambda i: (i, 0)),
        ),
        compiler_params=pltpu.CompilerParams(
            dimension_semantics=("parallel",)),   # shards batch tiles across v7x cores
    )(x_flat, lens, w_ih0, w_rec, b_rec, fc_w, fc_b)
    return out[:B, :num_classes]


# ------------------------- pure-JAX reference (f32) --------------------------


def _reference_forward(x, params, *, feature_names, emb_names, seq_len,
                       hidden, num_layers, num_classes):
    B = x.shape[0]
    H = hidden
    cat, lengths = _build_features(x, params, feature_names=feature_names,
                                   emb_names=emb_names, seq_len=seq_len)
    cat = cat.astype(jnp.float32)
    layer_in = cat
    for l in range(num_layers):
        w_ih, w_hh, b = params['w_ih'][l], params['w_hh'][l], params['b'][l]
        h = jnp.zeros((B, H), jnp.float32)
        c = jnp.zeros((B, H), jnp.float32)
        outs = []
        for t in range(seq_len):
            g = layer_in[:, t, :] @ w_ih + h @ w_hh + b
            i_g = jax.nn.sigmoid(g[:, 0 * H:1 * H])
            f_g = jax.nn.sigmoid(g[:, 1 * H:2 * H])
            g_g = jnp.tanh(g[:, 2 * H:3 * H])
            o_g = jax.nn.sigmoid(g[:, 3 * H:4 * H])
            c = f_g * c + i_g * g_g
            h = o_g * jnp.tanh(c)
            outs.append(h)
        layer_in = jnp.stack(outs, axis=1)
    last = layer_in[jnp.arange(B), lengths - 1]
    return jax.nn.sigmoid(last @ params['fc_w'] + params['fc_b'])


# --------------------------------- main --------------------------------------


if __name__ == "__main__":
    HIDDEN = 32
    NUM_LAYERS = 2
    SEQ_LEN = 8
    NUM_CLASSES = 4
    B = 2

    vocab_sizes = {'Action': 10, 'Resource': 12, 'EventOrigin': 6}
    emb_names = tuple(vocab_sizes.keys())
    feature_names = tuple(list(vocab_sizes.keys()) + NUMERIC_NAMES)  # 8 features
    num_features = len(feature_names)

    # Length derivation (like the PyTorch model) reads the first seq_len columns
    # of x, so the first feature must be a categorical column with padding == 0.
    assert feature_names[0] in emb_names

    key = jax.random.PRNGKey(0)
    key_p, key_x = jax.random.split(key)
    params = init_params(key_p, vocab_sizes, HIDDEN, NUM_LAYERS, NUM_CLASSES)

    # Build x: [B, num_features * seq_len]; each feature occupies a contiguous
    # block of SEQ_LEN columns (PyTorch model's layout).
    seq_lengths = jnp.array([5, 8], dtype=jnp.int32)
    pos = jnp.arange(SEQ_LEN)[None, :]
    valid = (pos < seq_lengths[:, None]).astype(jnp.float32)

    cols = []
    xkeys = jax.random.split(key_x, num_features)
    for fi, name in enumerate(feature_names):
        if name in vocab_sizes:
            vsz = vocab_sizes[name]
            ids = jax.random.randint(xkeys[fi], (B, SEQ_LEN), 1, vsz + 1)
            cols.append(ids.astype(jnp.float32) * valid)   # 0 = padding
        else:
            vals = jax.random.uniform(xkeys[fi], (B, SEQ_LEN), jnp.float32,
                                      0.1, 1.0)
            cols.append(vals * valid)
    x = jnp.concatenate(cols, axis=1)  # [2, 64]

    out = lstm_model_forward(
        x, params,
        feature_names=feature_names, emb_names=emb_names, seq_len=SEQ_LEN,
        hidden=HIDDEN, num_layers=NUM_LAYERS, num_classes=NUM_CLASSES)
    out = jax.block_until_ready(out)

    ref = _reference_forward(
        x, params,
        feature_names=feature_names, emb_names=emb_names, seq_len=SEQ_LEN,
        hidden=HIDDEN, num_layers=NUM_LAYERS, num_classes=NUM_CLASSES)

    assert out.shape == (B, NUM_CLASSES)
    assert bool(jnp.all(jnp.isfinite(out)))
    assert bool(jnp.all((out >= 0.0) & (out <= 1.0)))
    max_err = float(jnp.max(jnp.abs(out - ref)))
    assert max_err < 5e-2, max_err   # bf16 matmuls vs f32 reference
    print("KERNEL_OK")
</pallas_src>

<mosaic_0001>
module attributes {stable_mosaic.version = 11 : i64} {
  func.func @kernel(%arg0: i32, %arg1: memref<64x128xbf16, #tpu.memory_space<vmem>>, %arg2: memref<8x1xi32, #tpu.memory_space<vmem>>, %arg3: memref<128x128xbf16, #tpu.memory_space<vmem>>, %arg4: memref<64x256xbf16, #tpu.memory_space<vmem>>, %arg5: memref<1x256xf32, #tpu.memory_space<vmem>>, %arg6: memref<32x128xbf16, #tpu.memory_space<vmem>>, %arg7: memref<1x128xf32, #tpu.memory_space<vmem>>, %arg8: memref<8x128xf32, #tpu.memory_space<vmem>>) attributes {dimension_semantics = [#tpu.dimension_semantics<parallel>], iteration_bounds = array<i64: 1>, scalar_prefetch = 0 : i64, scratch_operands = 0 : i64, tpu.core_type = #tpu.core_type<tc>, window_params = [{transform_indices = @transform_0, window_bounds = array<i64: 64, 128>}, {transform_indices = @transform_1, window_bounds = array<i64: 8, 1>}, {pipeline_mode = #tpu.pipeline_mode<synchronous>, transform_indices = @transform_2, window_bounds = array<i64: 128, 128>}, {pipeline_mode = #tpu.pipeline_mode<synchronous>, transform_indices = @transform_3, window_bounds = array<i64: 64, 256>}, {pipeline_mode = #tpu.pipeline_mode<synchronous>, transform_indices = @transform_4, window_bounds = array<i64: 1, 256>}, {pipeline_mode = #tpu.pipeline_mode<synchronous>, transform_indices = @transform_5, window_bounds = array<i64: 32, 128>}, {pipeline_mode = #tpu.pipeline_mode<synchronous>, transform_indices = @transform_6, window_bounds = array<i64: 1, 128>}, {transform_indices = @transform_7, window_bounds = array<i64: 8, 128>}]} {
    %c0 = arith.constant 0 : index
    %c0_0 = arith.constant 0 : index
    %0 = vector.load %arg2[%c0, %c0_0] : memref<8x1xi32, #tpu.memory_space<vmem>>, vector<8x1xi32>
    %c1_i32 = arith.constant 1 : i32
    %1 = vector.broadcast %c1_i32 : i32 to vector<8x1xi32>
    %2 = arith.subi %0, %1 : vector<8x1xi32>
    %c0_1 = arith.constant 0 : index
    %c0_2 = arith.constant 0 : index
    %3 = vector.load %arg4[%c0_1, %c0_2] : memref<64x256xbf16, #tpu.memory_space<vmem>>, vector<64x256xbf16>
    %c0_3 = arith.constant 0 : index
    %c0_4 = arith.constant 0 : index
    %4 = vector.load %arg5[%c0_3, %c0_4] : memref<1x256xf32, #tpu.memory_space<vmem>>, vector<1x256xf32>
    %c0_5 = arith.constant 0 : index
    %c0_6 = arith.constant 0 : index
    %5 = vector.load %arg1[%c0_5, %c0_6] : memref<64x128xbf16, #tpu.memory_space<vmem>>, vector<64x128xbf16>
    %c0_7 = arith.constant 0 : index
    %c0_8 = arith.constant 0 : index
    %6 = vector.load %arg3[%c0_7, %c0_8] : memref<128x128xbf16, #tpu.memory_space<vmem>>, vector<128x128xbf16>
    %cst = arith.constant dense<0.000000e+00> : vector<64x128xf32>
    %7 = tpu.matmul %5, %6, %cst {dimension_numbers = #tpu.dot_dimension_numbers<[1], [0], [0], [1], [0, 0, 1, 1], [], []>} : vector<64x128xbf16>, vector<128x128xbf16>, vector<64x128xf32> -> vector<64x128xf32>
    %cst_9 = arith.constant 0.000000e+00 : bf16
    %8 = vector.broadcast %cst_9 : bf16 to vector<8x32xbf16>
    %cst_10 = arith.constant 0.000000e+00 : bf16
    %9 = vector.broadcast %cst_10 : bf16 to vector<8x32xbf16>
    %cst_11 = arith.constant 0.000000e+00 : f32
    %10 = vector.broadcast %cst_11 : f32 to vector<8x32xf32>
    %cst_12 = arith.constant 0.000000e+00 : f32
    %11 = vector.broadcast %cst_12 : f32 to vector<8x32xf32>
    %cst_13 = arith.constant 0.000000e+00 : bf16
    %12 = vector.broadcast %cst_13 : bf16 to vector<8x32xbf16>
    %13 = tpu.concatenate %8, %9 in 1 : vector<8x32xbf16>, vector<8x32xbf16> -> vector<8x64xbf16>
    %cst_14 = arith.constant dense<0.000000e+00> : vector<8x256xf32>
    %14 = tpu.matmul %13, %3, %cst_14 {dimension_numbers = #tpu.dot_dimension_numbers<[1], [0], [0], [1], [0, 0, 1, 1], [], []>} : vector<8x64xbf16>, vector<64x256xbf16>, vector<8x256xf32> -> vector<8x256xf32>
    %15 = vector.broadcast %4 : vector<1x256xf32> to vector<8x256xf32>
    %16 = arith.addf %14, %15 : vector<8x256xf32>
    %17 = vector.extract_strided_slice %16 {offsets = [0, 0], sizes = [8, 128], strides = [1, 1]} : vector<8x256xf32> to vector<8x128xf32>
    %18 = vector.extract_strided_slice %7 {offsets = [0, 0], sizes = [8, 128], strides = [1, 1]} : vector<64x128xf32> to vector<8x128xf32>
    %19 = arith.addf %17, %18 : vector<8x128xf32>
    %20 = arith.negf %19 : vector<8x128xf32>
    %21 = math.exp %20 : vector<8x128xf32>
    %cst_15 = arith.constant 1.000000e+00 : f32
    %22 = vector.broadcast %cst_15 : f32 to vector<8x128xf32>
    %23 = arith.addf %22, %21 : vector<8x128xf32>
    %24 = arith.divf %22, %23 : vector<8x128xf32>
    %25 = vector.extract_strided_slice %24 {offsets = [0, 0], sizes = [8, 32], strides = [1, 1]} : vector<8x128xf32> to vector<8x32xf32>
    %26 = vector.extract_strided_slice %24 {offsets = [0, 32], sizes = [8, 32], strides = [1, 1]} : vector<8x128xf32> to vector<8x32xf32>
    %27 = vector.extract_strided_slice %24 {offsets = [0, 64], sizes = [8, 32], strides = [1, 1]} : vector<8x128xf32> to vector<8x32xf32>
    %cst_16 = arith.constant 2.000000e+00 : f32
    %28 = vector.broadcast %cst_16 : f32 to vector<8x32xf32>
    %29 = arith.mulf %28, %27 : vector<8x32xf32>
    %cst_17 = arith.constant 1.000000e+00 : f32
    %30 = vector.broadcast %cst_17 : f32 to vector<8x32xf32>
    %31 = arith.subf %29, %30 : vector<8x32xf32>
    %32 = vector.extract_strided_slice %24 {offsets = [0, 96], sizes = [8, 32], strides = [1, 1]} : vector<8x128xf32> to vector<8x32xf32>
    %33 = arith.mulf %26, %10 : vector<8x32xf32>
    %34 = arith.mulf %25, %31 : vector<8x32xf32>
    %35 = arith.addf %33, %34 : vector<8x32xf32>
    %36 = math.tanh %35 : vector<8x32xf32>
    %37 = arith.mulf %32, %36 : vector<8x32xf32>
    %38 = arith.truncf %37 : vector<8x32xf32> to vector<8x32xbf16>
    %39 = tpu.concatenate %38, %9 in 1 : vector<8x32xbf16>, vector<8x32xbf16> -> vector<8x64xbf16>
    %cst_18 = arith.constant dense<0.000000e+00> : vector<8x256xf32>
    %40 = tpu.matmul %39, %3, %cst_18 {dimension_numbers = #tpu.dot_dimension_numbers<[1], [0], [0], [1], [0, 0, 1, 1], [], []>} : vector<8x64xbf16>, vector<64x256xbf16>, vector<8x256xf32> -> vector<8x256xf32>
    %41 = vector.broadcast %4 : vector<1x256xf32> to vector<8x256xf32>
    %42 = arith.addf %40, %41 : vector<8x256xf32>
    %43 = vector.extract_strided_slice %42 {offsets = [0, 0], sizes = [8, 128], strides = [1, 1]} : vector<8x256xf32> to vector<8x128xf32>
    %44 = vector.extract_strided_slice %7 {offsets = [8, 0], sizes = [8, 128], strides = [1, 1]} : vector<64x128xf32> to vector<8x128xf32>
    %45 = arith.addf %43, %44 : vector<8x128xf32>
    %46 = arith.negf %45 : vector<8x128xf32>
    %47 = math.exp %46 : vector<8x128xf32>
    %cst_19 = arith.constant 1.000000e+00 : f32
    %48 = vector.broadcast %cst_19 : f32 to vector<8x128xf32>
    %49 = arith.addf %48, %47 : vector<8x128xf32>
    %50 = arith.divf %48, %49 : vector<8x128xf32>
    %51 = vector.extract_strided_slice %50 {offsets = [0, 0], sizes = [8, 32], strides = [1, 1]} : vector<8x128xf32> to vector<8x32xf32>
    %52 = vector.extract_strided_slice %50 {offsets = [0, 32], sizes = [8, 32], strides = [1, 1]} : vector<8x128xf32> to vector<8x32xf32>
    %53 = vector.extract_strided_slice %50 {offsets = [0, 64], sizes = [8, 32], strides = [1, 1]} : vector<8x128xf32> to vector<8x32xf32>
    %cst_20 = arith.constant 2.000000e+00 : f32
    %54 = vector.broadcast %cst_20 : f32 to vector<8x32xf32>
    %55 = arith.mulf %54, %53 : vector<8x32xf32>
    %cst_21 = arith.constant 1.000000e+00 : f32
    %56 = vector.broadcast %cst_21 : f32 to vector<8x32xf32>
    %57 = arith.subf %55, %56 : vector<8x32xf32>
    %58 = vector.extract_strided_slice %50 {offsets = [0, 96], sizes = [8, 32], strides = [1, 1]} : vector<8x128xf32> to vector<8x32xf32>
    %59 = arith.mulf %52, %35 : vector<8x32xf32>
    %60 = arith.mulf %51, %57 : vector<8x32xf32>
    %61 = arith.addf %59, %60 : vector<8x32xf32>
    %62 = math.tanh %61 : vector<8x32xf32>
    %63 = arith.mulf %58, %62 : vector<8x32xf32>
    %64 = arith.truncf %63 : vector<8x32xf32> to vector<8x32xbf16>
    %65 = vector.extract_strided_slice %42 {offsets = [0, 128], sizes = [8, 128], strides = [1, 1]} : vector<8x256xf32> to vector<8x128xf32>
    %66 = arith.negf %65 : vector<8x128xf32>
    %67 = math.exp %66 : vector<8x128xf32>
    %cst_22 = arith.constant 1.000000e+00 : f32
    %68 = vector.broadcast %cst_22 : f32 to vector<8x128xf32>
    %69 = arith.addf %68, %67 : vector<8x128xf32>
    %70 = arith.divf %68, %69 : vector<8x128xf32>
    %71 = vector.extract_strided_slice %70 {offsets = [0, 0], sizes = [8, 32], strides = [1, 1]} : vector<8x128xf32> to vector<8x32xf32>
    %72 = vector.extract_strided_slice %70 {offsets = [0, 32], sizes = [8, 32], strides = [1, 1]} : vector<8x128xf32> to vector<8x32xf32>
    %73 = vector.extract_strided_slice %70 {offsets = [0, 64], sizes = [8, 32], strides = [1, 1]} : vector<8x128xf32> to vector<8x32xf32>
    %cst_23 = arith.constant 2.000000e+00 : f32
    %74 = vector.broadcast %cst_23 : f32 to vector<8x32xf32>
    %75 = arith.mulf %74, %73 : vector<8x32xf32>
    %cst_24 = arith.constant 1.000000e+00 : f32
    %76 = vector.broadcast %cst_24 : f32 to vector<8x32xf32>
    %77 = arith.subf %75, %76 : vector<8x32xf32>
    %78 = vector.extract_strided_slice %70 {offsets = [0, 96], sizes = [8, 32], strides = [1, 1]} : vector<8x128xf32> to vector<8x32xf32>
    %79 = arith.mulf %72, %11 : vector<8x32xf32>
    %80 = arith.mulf %71, %77 : vector<8x32xf32>
    %81 = arith.addf %79, %80 : vector<8x32xf32>
    %82 = math.tanh %81 : vector<8x32xf32>
    %83 = arith.mulf %78, %82 : vector<8x32xf32>
    %84 = arith.truncf %83 : vector<8x32xf32> to vector<8x32xbf16>
    %c0_i32 = arith.constant 0 : i32
    %85 = vector.broadcast %c0_i32 : i32 to vector<8x1xi32>
    %86 = arith.cmpi eq, %2, %85 : vector<8x1xi32>
    %87 = vector.shape_cast %86 : vector<8x1xi1> to vector<8x1xi1>
    %88 = vector.broadcast %87 : vector<8x1xi1> to vector<8x32xi1>
    %89 = arith.select %88, %84, %12 : vector<8x32xi1>, vector<8x32xbf16>
    %90 = tpu.concatenate %64, %84 in 1 : vector<8x32xbf16>, vector<8x32xbf16> -> vector<8x64xbf16>
    %cst_25 = arith.constant dense<0.000000e+00> : vector<8x256xf32>
    %91 = tpu.matmul %90, %3, %cst_25 {dimension_numbers = #tpu.dot_dimension_numbers<[1], [0], [0], [1], [0, 0, 1, 1], [], []>} : vector<8x64xbf16>, vector<64x256xbf16>, vector<8x256xf32> -> vector<8x256xf32>
    %92 = vector.broadcast %4 : vector<1x256xf32> to vector<8x256xf32>
    %93 = arith.addf %91, %92 : vector<8x256xf32>
    %94 = vector.extract_strided_slice %93 {offsets = [0, 0], sizes = [8, 128], strides = [1, 1]} : vector<8x256xf32> to vector<8x128xf32>
    %95 = vector.extract_strided_slice %7 {offsets = [16, 0], sizes = [8, 128], strides = [1, 1]} : vector<64x128xf32> to vector<8x128xf32>
    %96 = arith.addf %94, %95 : vector<8x128xf32>
    %97 = arith.negf %96 : vector<8x128xf32>
    %98 = math.exp %97 : vector<8x128xf32>
    %cst_26 = arith.constant 1.000000e+00 : f32
    %99 = vector.broadcast %cst_26 : f32 to vector<8x128xf32>
    %100 = arith.addf %99, %98 : vector<8x128xf32>
    %101 = arith.divf %99, %100 : vector<8x128xf32>
    %102 = vector.extract_strided_slice %101 {offsets = [0, 0], sizes = [8, 32], strides = [1, 1]} : vector<8x128xf32> to vector<8x32xf32>
    %103 = vector.extract_strided_slice %101 {offsets = [0, 32], sizes = [8, 32], strides = [1, 1]} : vector<8x128xf32> to vector<8x32xf32>
    %104 = vector.extract_strided_slice %101 {offsets = [0, 64], sizes = [8, 32], strides = [1, 1]} : vector<8x128xf32> to vector<8x32xf32>
    %cst_27 = arith.constant 2.000000e+00 : f32
    %105 = vector.broadcast %cst_27 : f32 to vector<8x32xf32>
    %106 = arith.mulf %105, %104 : vector<8x32xf32>
    %cst_28 = arith.constant 1.000000e+00 : f32
    %107 = vector.broadcast %cst_28 : f32 to vector<8x32xf32>
    %108 = arith.subf %106, %107 : vector<8x32xf32>
    %109 = vector.extract_strided_slice %101 {offsets = [0, 96], sizes = [8, 32], strides = [1, 1]} : vector<8x128xf32> to vector<8x32xf32>
    %110 = arith.mulf %103, %61 : vector<8x32xf32>
    %111 = arith.mulf %102, %108 : vector<8x32xf32>
    %112 = arith.addf %110, %111 : vector<8x32xf32>
    %113 = math.tanh %112 : vector<8x32xf32>
    %114 = arith.mulf %109, %113 : vector<8x32xf32>
    %115 = arith.truncf %114 : vector<8x32xf32> to vector<8x32xbf16>
    %116 = vector.extract_strided_slice %93 {offsets = [0, 128], sizes = [8, 128], strides = [1, 1]} : vector<8x256xf32> to vector<8x128xf32>
    %117 = arith.negf %116 : vector<8x128xf32>
    %118 = math.exp %117 : vector<8x128xf32>
    %cst_29 = arith.constant 1.000000e+00 : f32
    %119 = vector.broadcast %cst_29 : f32 to vector<8x128xf32>
    %120 = arith.addf %119, %118 : vector<8x128xf32>
    %121 = arith.divf %119, %120 : vector<8x128xf32>
    %122 = vector.extract_strided_slice %121 {offsets = [0, 0], sizes = [8, 32], strides = [1, 1]} : vector<8x128xf32> to vector<8x32xf32>
    %123 = vector.extract_strided_slice %121 {offsets = [0, 32], sizes = [8, 32], strides = [1, 1]} : vector<8x128xf32> to vector<8x32xf32>
    %124 = vector.extract_strided_slice %121 {offsets = [0, 64], sizes = [8, 32], strides = [1, 1]} : vector<8x128xf32> to vector<8x32xf32>
    %cst_30 = arith.constant 2.000000e+00 : f32
    %125 = vector.broadcast %cst_30 : f32 to vector<8x32xf32>
    %126 = arith.mulf %125, %124 : vector<8x32xf32>
    %cst_31 = arith.constant 1.000000e+00 : f32
    %127 = vector.broadcast %cst_31 : f32 to vector<8x32xf32>
    %128 = arith.subf %126, %127 : vector<8x32xf32>
    %129 = vector.extract_strided_slice %121 {offsets = [0, 96], sizes = [8, 32], strides = [1, 1]} : vector<8x128xf32> to vector<8x32xf32>
    %130 = arith.mulf %123, %81 : vector<8x32xf32>
    %131 = arith.mulf %122, %128 : vector<8x32xf32>
    %132 = arith.addf %130, %131 : vector<8x32xf32>
    %133 = math.tanh %132 : vector<8x32xf32>
    %134 = arith.mulf %129, %133 : vector<8x32xf32>
    %135 = arith.truncf %134 : vector<8x32xf32> to vector<8x32xbf16>
    %c1_i32_32 = arith.constant 1 : i32
    %136 = vector.broadcast %c1_i32_32 : i32 to vector<8x1xi32>
    %137 = arith.cmpi eq, %2, %136 : vector<8x1xi32>
    %138 = vector.shape_cast %137 : vector<8x1xi1> to vector<8x1xi1>
    %139 = vector.broadcast %138 : vector<8x1xi1> to vector<8x32xi1>
    %140 = arith.select %139, %135, %89 : vector<8x32xi1>, vector<8x32xbf16>
    %141 = tpu.concatenate %115, %135 in 1 : vector<8x32xbf16>, vector<8x32xbf16> -> vector<8x64xbf16>
    %cst_33 = arith.constant dense<0.000000e+00> : vector<8x256xf32>
    %142 = tpu.matmul %141, %3, %cst_33 {dimension_numbers = #tpu.dot_dimension_numbers<[1], [0], [0], [1], [0, 0, 1, 1], [], []>} : vector<8x64xbf16>, vector<64x256xbf16>, vector<8x256xf32> -> vector<8x256xf32>
    %143 = vector.broadcast %4 : vector<1x256xf32> to vector<8x256xf32>
    %144 = arith.addf %142, %143 : vector<8x256xf32>
    %145 = vector.extract_strided_slice %144 {offsets = [0, 0], sizes = [8, 128], strides = [1, 1]} : vector<8x256xf32> to vector<8x128xf32>
    %146 = vector.extract_strided_slice %7 {offsets = [24, 0], sizes = [8, 128], strides = [1, 1]} : vector<64x128xf32> to vector<8x128xf32>
    %147 = arith.addf %145, %146 : vector<8x128xf32>
    %148 = arith.negf %147 : vector<8x128xf32>
    %149 = math.exp %148 : vector<8x128xf32>
    %cst_34 = arith.constant 1.000000e+00 : f32
    %150 = vector.broadcast %cst_34 : f32 to vector<8x128xf32>
    %151 = arith.addf %150, %149 : vector<8x128xf32>
    %152 = arith.divf %150, %151 : vector<8x128xf32>
    %153 = vector.extract_strided_slice %152 {offsets = [0, 0], sizes = [8, 32], strides = [1, 1]} : vector<8x128xf32> to vector<8x32xf32>
    %154 = vector.extract_strided_slice %152 {offsets = [0, 32], sizes = [8, 32], strides = [1, 1]} : vector<8x128xf32> to vector<8x32xf32>
    %155 = vector.extract_strided_slice %152 {offsets = [0, 64], sizes = [8, 32], strides = [1, 1]} : vector<8x128xf32> to vector<8x32xf32>
    %cst_35 = arith.constant 2.000000e+00 : f32
    %156 = vector.broadcast %cst_35 : f32 to vector<8x32xf32>
    %157 = arith.mulf %156, %155 : vector<8x32xf32>
    %cst_36 = arith.constant 1.000000e+00 : f32
    %158 = vector.broadcast %cst_36 : f32 to vector<8x32xf32>
    %159 = arith.subf %157, %158 : vector<8x32xf32>
    %160 = vector.extract_strided_slice %152 {offsets = [0, 96], sizes = [8, 32], strides = [1, 1]} : vector<8x128xf32> to vector<8x32xf32>
    %161 = arith.mulf %154, %112 : vector<8x32xf32>
    %162 = arith.mulf %153, %159 : vector<8x32xf32>
    %163 = arith.addf %161, %162 : vector<8x32xf32>
    %164 = math.tanh %163 : vector<8x32xf32>
    %165 = arith.mulf %160, %164 : vector<8x32xf32>
    %166 = arith.truncf %165 : vector<8x32xf32> to vector<8x32xbf16>
    %167 = vector.extract_strided_slice %144 {offsets = [0, 128], sizes = [8, 128], strides = [1, 1]} : vector<8x256xf32> to vector<8x128xf32>
    %168 = arith.negf %167 : vector<8x128xf32>
    %169 = math.exp %168 : vector<8x128xf32>
    %cst_37 = arith.constant 1.000000e+00 : f32
    %170 = vector.broadcast %cst_37 : f32 to vector<8x128xf32>
    %171 = arith.addf %170, %169 : vector<8x128xf32>
    %172 = arith.divf %170, %171 : vector<8x128xf32>
    %173 = vector.extract_strided_slice %172 {offsets = [0, 0], sizes = [8, 32], strides = [1, 1]} : vector<8x128xf32> to vector<8x32xf32>
    %174 = vector.extract_strided_slice %172 {offsets = [0, 32], sizes = [8, 32], strides = [1, 1]} : vector<8x128xf32> to vector<8x32xf32>
    %175 = vector.extract_strided_slice %172 {offsets = [0, 64], sizes = [8, 32], strides = [1, 1]} : vector<8x128xf32> to vector<8x32xf32>
    %cst_38 = arith.constant 2.000000e+00 : f32
    %176 = vector.broadcast %cst_38 : f32 to vector<8x32xf32>
    %177 = arith.mulf %176, %175 : vector<8x32xf32>
    %cst_39 = arith.constant 1.000000e+00 : f32
    %178 = vector.broadcast %cst_39 : f32 to vector<8x32xf32>
    %179 = arith.subf %177, %178 : vector<8x32xf32>
    %180 = vector.extract_strided_slice %172 {offsets = [0, 96], sizes = [8, 32], strides = [1, 1]} : vector<8x128xf32> to vector<8x32xf32>
    %181 = arith.mulf %174, %132 : vector<8x32xf32>
    %182 = arith.mulf %173, %179 : vector<8x32xf32>
    %183 = arith.addf %181, %182 : vector<8x32xf32>
    %184 = math.tanh %183 : vector<8x32xf32>
    %185 = arith.mulf %180, %184 : vector<8x32xf32>
    %186 = arith.truncf %185 : vector<8x32xf32> to vector<8x32xbf16>
    %c2_i32 = arith.constant 2 : i32
    %187 = vector.broadcast %c2_i32 : i32 to vector<8x1xi32>
    %188 = arith.cmpi eq, %2, %187 : vector<8x1xi32>
    %189 = vector.shape_cast %188 : vector<8x1xi1> to vector<8x1xi1>
    %190 = vector.broadcast %189 : vector<8x1xi1> to vector<8x32xi1>
    %191 = arith.select %190, %186, %140 : vector<8x32xi1>, vector<8x32xbf16>
    %192 = tpu.concatenate %166, %186 in 1 : vector<8x32xbf16>, vector<8x32xbf16> -> vector<8x64xbf16>
    %cst_40 = arith.constant dense<0.000000e+00> : vector<8x256xf32>
    %193 = tpu.matmul %192, %3, %cst_40 {dimension_numbers = #tpu.dot_dimension_numbers<[1], [0], [0], [1], [0, 0, 1, 1], [], []>} : vector<8x64xbf16>, vector<64x256xbf16>, vector<8x256xf32> -> vector<8x256xf32>
    %194 = vector.broadcast %4 : vector<1x256xf32> to vector<8x256xf32>
    %195 = arith.addf %193, %194 : vector<8x256xf32>
    %196 = vector.extract_strided_slice %195 {offsets = [0, 0], sizes = [8, 128], strides = [1, 1]} : vector<8x256xf32> to vector<8x128xf32>
    %197 = vector.extract_strided_slice %7 {offsets = [32, 0], sizes = [8, 128], strides = [1, 1]} : vector<64x128xf32> to vector<8x128xf32>
    %198 = arith.addf %196, %197 : vector<8x128xf32>
    %199 = arith.negf %198 : vector<8x128xf32>
    %200 = math.exp %199 : vector<8x128xf32>
    %cst_41 = arith.constant 1.000000e+00 : f32
    %201 = vector.broadcast %cst_41 : f32 to vector<8x128xf32>
    %202 = arith.addf %201, %200 : vector<8x128xf32>
    %203 = arith.divf %201, %202 : vector<8x128xf32>
    %204 = vector.extract_strided_slice %203 {offsets = [0, 0], sizes = [8, 32], strides = [1, 1]} : vector<8x128xf32> to vector<8x32xf32>
    %205 = vector.extract_strided_slice %203 {offsets = [0, 32], sizes = [8, 32], strides = [1, 1]} : vector<8x128xf32> to vector<8x32xf32>
    %206 = vector.extract_strided_slice %203 {offsets = [0, 64], sizes = [8, 32], strides = [1, 1]} : vector<8x128xf32> to vector<8x32xf32>
    %cst_42 = arith.constant 2.000000e+00 : f32
    %207 = vector.broadcast %cst_42 : f32 to vector<8x32xf32>
    %208 = arith.mulf %207, %206 : vector<8x32xf32>
    %cst_43 = arith.constant 1.000000e+00 : f32
    %209 = vector.broadcast %cst_43 : f32 to vector<8x32xf32>
    %210 = arith.subf %208, %209 : vector<8x32xf32>
    %211 = vector.extract_strided_slice %203 {offsets = [0, 96], sizes = [8, 32], strides = [1, 1]} : vector<8x128xf32> to vector<8x32xf32>
    %212 = arith.mulf %205, %163 : vector<8x32xf32>
    %213 = arith.mulf %204, %210 : vector<8x32xf32>
    %214 = arith.addf %212, %213 : vector<8x32xf32>
    %215 = math.tanh %214 : vector<8x32xf32>
    %216 = arith.mulf %211, %215 : vector<8x32xf32>
    %217 = arith.truncf %216 : vector<8x32xf32> to vector<8x32xbf16>
    %218 = vector.extract_strided_slice %195 {offsets = [0, 128], sizes = [8, 128], strides = [1, 1]} : vector<8x256xf32> to vector<8x128xf32>
    %219 = arith.negf %218 : vector<8x128xf32>
    %220 = math.exp %219 : vector<8x128xf32>
    %cst_44 = arith.constant 1.000000e+00 : f32
    %221 = vector.broadcast %cst_44 : f32 to vector<8x128xf32>
    %222 = arith.addf %221, %220 : vector<8x128xf32>
    %223 = arith.divf %221, %222 : vector<8x128xf32>
    %224 = vector.extract_strided_slice %223 {offsets = [0, 0], sizes = [8, 32], strides = [1, 1]} : vector<8x128xf32> to vector<8x32xf32>
    %225 = vector.extract_strided_slice %223 {offsets = [0, 32], sizes = [8, 32], strides = [1, 1]} : vector<8x128xf32> to vector<8x32xf32>
    %226 = vector.extract_strided_slice %223 {offsets = [0, 64], sizes = [8, 32], strides = [1, 1]} : vector<8x128xf32> to vector<8x32xf32>
    %cst_45 = arith.constant 2.000000e+00 : f32
    %227 = vector.broadcast %cst_45 : f32 to vector<8x32xf32>
    %228 = arith.mulf %227, %226 : vector<8x32xf32>
    %cst_46 = arith.constant 1.000000e+00 : f32
    %229 = vector.broadcast %cst_46 : f32 to vector<8x32xf32>
    %230 = arith.subf %228, %229 : vector<8x32xf32>
    %231 = vector.extract_strided_slice %223 {offsets = [0, 96], sizes = [8, 32], strides = [1, 1]} : vector<8x128xf32> to vector<8x32xf32>
    %232 = arith.mulf %225, %183 : vector<8x32xf32>
    %233 = arith.mulf %224, %230 : vector<8x32xf32>
    %234 = arith.addf %232, %233 : vector<8x32xf32>
    %235 = math.tanh %234 : vector<8x32xf32>
    %236 = arith.mulf %231, %235 : vector<8x32xf32>
    %237 = arith.truncf %236 : vector<8x32xf32> to vector<8x32xbf16>
    %c3_i32 = arith.constant 3 : i32
    %238 = vector.broadcast %c3_i32 : i32 to vector<8x1xi32>
    %239 = arith.cmpi eq, %2, %238 : vector<8x1xi32>
    %240 = vector.shape_cast %239 : vector<8x1xi1> to vector<8x1xi1>
    %241 = vector.broadcast %240 : vector<8x1xi1> to vector<8x32xi1>
    %242 = arith.select %241, %237, %191 : vector<8x32xi1>, vector<8x32xbf16>
    %243 = tpu.concatenate %217, %237 in 1 : vector<8x32xbf16>, vector<8x32xbf16> -> vector<8x64xbf16>
    %cst_47 = arith.constant dense<0.000000e+00> : vector<8x256xf32>
    %244 = tpu.matmul %243, %3, %cst_47 {dimension_numbers = #tpu.dot_dimension_numbers<[1], [0], [0], [1], [0, 0, 1, 1], [], []>} : vector<8x64xbf16>, vector<64x256xbf16>, vector<8x256xf32> -> vector<8x256xf32>
    %245 = vector.broadcast %4 : vector<1x256xf32> to vector<8x256xf32>
    %246 = arith.addf %244, %245 : vector<8x256xf32>
    %247 = vector.extract_strided_slice %246 {offsets = [0, 0], sizes = [8, 128], strides = [1, 1]} : vector<8x256xf32> to vector<8x128xf32>
    %248 = vector.extract_strided_slice %7 {offsets = [40, 0], sizes = [8, 128], strides = [1, 1]} : vector<64x128xf32> to vector<8x128xf32>
    %249 = arith.addf %247, %248 : vector<8x128xf32>
    %250 = arith.negf %249 : vector<8x128xf32>
    %251 = math.exp %250 : vector<8x128xf32>
    %cst_48 = arith.constant 1.000000e+00 : f32
    %252 = vector.broadcast %cst_48 : f32 to vector<8x128xf32>
    %253 = arith.addf %252, %251 : vector<8x128xf32>
    %254 = arith.divf %252, %253 : vector<8x128xf32>
    %255 = vector.extract_strided_slice %254 {offsets = [0, 0], sizes = [8, 32], strides = [1, 1]} : vector<8x128xf32> to vector<8x32xf32>
    %256 = vector.extract_strided_slice %254 {offsets = [0, 32], sizes = [8, 32], strides = [1, 1]} : vector<8x128xf32> to vector<8x32xf32>
    %257 = vector.extract_strided_slice %254 {offsets = [0, 64], sizes = [8, 32], strides = [1, 1]} : vector<8x128xf32> to vector<8x32xf32>
    %cst_49 = arith.constant 2.000000e+00 : f32
    %258 = vector.broadcast %cst_49 : f32 to vector<8x32xf32>
    %259 = arith.mulf %258, %257 : vector<8x32xf32>
    %cst_50 = arith.constant 1.000000e+00 : f32
    %260 = vector.broadcast %cst_50 : f32 to vector<8x32xf32>
    %261 = arith.subf %259, %260 : vector<8x32xf32>
    %262 = vector.extract_strided_slice %254 {offsets = [0, 96], sizes = [8, 32], strides = [1, 1]} : vector<8x128xf32> to vector<8x32xf32>
    %263 = arith.mulf %256, %214 : vector<8x32xf32>
    %264 = arith.mulf %255, %261 : vector<8x32xf32>
    %265 = arith.addf %263, %264 : vector<8x32xf32>
    %266 = math.tanh %265 : vector<8x32xf32>
    %267 = arith.mulf %262, %266 : vector<8x32xf32>
    %268 = arith.truncf %267 : vector<8x32xf32> to vector<8x32xbf16>
    %269 = vector.extract_strided_slice %246 {offsets = [0, 128], sizes = [8, 128], strides = [1, 1]} : vector<8x256xf32> to vector<8x128xf32>
    %270 = arith.negf %269 : vector<8x128xf32>
    %271 = math.exp %270 : vector<8x128xf32>
    %cst_51 = arith.constant 1.000000e+00 : f32
    %272 = vector.broadcast %cst_51 : f32 to vector<8x128xf32>
    %273 = arith.addf %272, %271 : vector<8x128xf32>
    %274 = arith.divf %272, %273 : vector<8x128xf32>
    %275 = vector.extract_strided_slice %274 {offsets = [0, 0], sizes = [8, 32], strides = [1, 1]} : vector<8x128xf32> to vector<8x32xf32>
    %276 = vector.extract_strided_slice %274 {offsets = [0, 32], sizes = [8, 32], strides = [1, 1]} : vector<8x128xf32> to vector<8x32xf32>
    %277 = vector.extract_strided_slice %274 {offsets = [0, 64], sizes = [8, 32], strides = [1, 1]} : vector<8x128xf32> to vector<8x32xf32>
    %cst_52 = arith.constant 2.000000e+00 : f32
    %278 = vector.broadcast %cst_52 : f32 to vector<8x32xf32>
    %279 = arith.mulf %278, %277 : vector<8x32xf32>
    %cst_53 = arith.constant 1.000000e+00 : f32
    %280 = vector.broadcast %cst_53 : f32 to vector<8x32xf32>
    %281 = arith.subf %279, %280 : vector<8x32xf32>
    %282 = vector.extract_strided_slice %274 {offsets = [0, 96], sizes = [8, 32], strides = [1, 1]} : vector<8x128xf32> to vector<8x32xf32>
    %283 = arith.mulf %276, %234 : vector<8x32xf32>
    %284 = arith.mulf %275, %281 : vector<8x32xf32>
    %285 = arith.addf %283, %284 : vector<8x32xf32>
    %286 = math.tanh %285 : vector<8x32xf32>
    %287 = arith.mulf %282, %286 : vector<8x32xf32>
    %288 = arith.truncf %287 : vector<8x32xf32> to vector<8x32xbf16>
    %c4_i32 = arith.constant 4 : i32
    %289 = vector.broadcast %c4_i32 : i32 to vector<8x1xi32>
    %290 = arith.cmpi eq, %2, %289 : vector<8x1xi32>
    %291 = vector.shape_cast %290 : vector<8x1xi1> to vector<8x1xi1>
    %292 = vector.broadcast %291 : vector<8x1xi1> to vector<8x32xi1>
    %293 = arith.select %292, %288, %242 : vector<8x32xi1>, vector<8x32xbf16>
    %294 = tpu.concatenate %268, %288 in 1 : vector<8x32xbf16>, vector<8x32xbf16> -> vector<8x64xbf16>
    %cst_54 = arith.constant dense<0.000000e+00> : vector<8x256xf32>
    %295 = tpu.matmul %294, %3, %cst_54 {dimension_numbers = #tpu.dot_dimension_numbers<[1], [0], [0], [1], [0, 0, 1, 1], [], []>} : vector<8x64xbf16>, vector<64x256xbf16>, vector<8x256xf32> -> vector<8x256xf32>
    %296 = vector.broadcast %4 : vector<1x256xf32> to vector<8x256xf32>
    %297 = arith.addf %295, %296 : vector<8x256xf32>
    %298 = vector.extract_strided_slice %297 {offsets = [0, 0], sizes = [8, 128], strides = [1, 1]} : vector<8x256xf32> to vector<8x128xf32>
    %299 = vector.extract_strided_slice %7 {offsets = [48, 0], sizes = [8, 128], strides = [1, 1]} : vector<64x128xf32> to vector<8x128xf32>
    %300 = arith.addf %298, %299 : vector<8x128xf32>
    %301 = arith.negf %300 : vector<8x128xf32>
    %302 = math.exp %301 : vector<8x128xf32>
    %cst_55 = arith.constant 1.000000e+00 : f32
    %303 = vector.broadcast %cst_55 : f32 to vector<8x128xf32>
    %304 = arith.addf %303, %302 : vector<8x128xf32>
    %305 = arith.divf %303, %304 : vector<8x128xf32>
    %306 = vector.extract_strided_slice %305 {offsets = [0, 0], sizes = [8, 32], strides = [1, 1]} : vector<8x128xf32> to vector<8x32xf32>
    %307 = vector.extract_strided_slice %305 {offsets = [0, 32], sizes = [8, 32], strides = [1, 1]} : vector<8x128xf32> to vector<8x32xf32>
    %308 = vector.extract_strided_slice %305 {offsets = [0, 64], sizes = [8, 32], strides = [1, 1]} : vector<8x128xf32> to vector<8x32xf32>
    %cst_56 = arith.constant 2.000000e+00 : f32
    %309 = vector.broadcast %cst_56 : f32 to vector<8x32xf32>
    %310 = arith.mulf %309, %308 : vector<8x32xf32>
    %cst_57 = arith.constant 1.000000e+00 : f32
    %311 = vector.broadcast %cst_57 : f32 to vector<8x32xf32>
    %312 = arith.subf %310, %311 : vector<8x32xf32>
    %313 = vector.extract_strided_slice %305 {offsets = [0, 96], sizes = [8, 32], strides = [1, 1]} : vector<8x128xf32> to vector<8x32xf32>
    %314 = arith.mulf %307, %265 : vector<8x32xf32>
    %315 = arith.mulf %306, %312 : vector<8x32xf32>
    %316 = arith.addf %314, %315 : vector<8x32xf32>
    %317 = math.tanh %316 : vector<8x32xf32>
    %318 = arith.mulf %313, %317 : vector<8x32xf32>
    %319 = arith.truncf %318 : vector<8x32xf32> to vector<8x32xbf16>
    %320 = vector.extract_strided_slice %297 {offsets = [0, 128], sizes = [8, 128], strides = [1, 1]} : vector<8x256xf32> to vector<8x128xf32>
    %321 = arith.negf %320 : vector<8x128xf32>
    %322 = math.exp %321 : vector<8x128xf32>
    %cst_58 = arith.constant 1.000000e+00 : f32
    %323 = vector.broadcast %cst_58 : f32 to vector<8x128xf32>
    %324 = arith.addf %323, %322 : vector<8x128xf32>
    %325 = arith.divf %323, %324 : vector<8x128xf32>
    %326 = vector.extract_strided_slice %325 {offsets = [0, 0], sizes = [8, 32], strides = [1, 1]} : vector<8x128xf32> to vector<8x32xf32>
    %327 = vector.extract_strided_slice %325 {offsets = [0, 32], sizes = [8, 32], strides = [1, 1]} : vector<8x128xf32> to vector<8x32xf32>
    %328 = vector.extract_strided_slice %325 {offsets = [0, 64], sizes = [8, 32], strides = [1, 1]} : vector<8x128xf32> to vector<8x32xf32>
    %cst_59 = arith.constant 2.000000e+00 : f32
    %329 = vector.broadcast %cst_59 : f32 to vector<8x32xf32>
    %330 = arith.mulf %329, %328 : vector<8x32xf32>
    %cst_60 = arith.constant 1.000000e+00 : f32
    %331 = vector.broadcast %cst_60 : f32 to vector<8x32xf32>
    %332 = arith.subf %330, %331 : vector<8x32xf32>
    %333 = vector.extract_strided_slice %325 {offsets = [0, 96], sizes = [8, 32], strides = [1, 1]} : vector<8x128xf32> to vector<8x32xf32>
    %334 = arith.mulf %327, %285 : vector<8x32xf32>
    %335 = arith.mulf %326, %332 : vector<8x32xf32>
    %336 = arith.addf %334, %335 : vector<8x32xf32>
    %337 = math.tanh %336 : vector<8x32xf32>
    %338 = arith.mulf %333, %337 : vector<8x32xf32>
    %339 = arith.truncf %338 : vector<8x32xf32> to vector<8x32xbf16>
    %c5_i32 = arith.constant 5 : i32
    %340 = vector.broadcast %c5_i32 : i32 to vector<8x1xi32>
    %341 = arith.cmpi eq, %2, %340 : vector<8x1xi32>
    %342 = vector.shape_cast %341 : vector<8x1xi1> to vector<8x1xi1>
    %343 = vector.broadcast %342 : vector<8x1xi1> to vector<8x32xi1>
    %344 = arith.select %343, %339, %293 : vector<8x32xi1>, vector<8x32xbf16>
    %345 = tpu.concatenate %319, %339 in 1 : vector<8x32xbf16>, vector<8x32xbf16> -> vector<8x64xbf16>
    %cst_61 = arith.constant dense<0.000000e+00> : vector<8x256xf32>
    %346 = tpu.matmul %345, %3, %cst_61 {dimension_numbers = #tpu.dot_dimension_numbers<[1], [0], [0], [1], [0, 0, 1, 1], [], []>} : vector<8x64xbf16>, vector<64x256xbf16>, vector<8x256xf32> -> vector<8x256xf32>
    %347 = vector.broadcast %4 : vector<1x256xf32> to vector<8x256xf32>
    %348 = arith.addf %346, %347 : vector<8x256xf32>
    %349 = vector.extract_strided_slice %348 {offsets = [0, 0], sizes = [8, 128], strides = [1, 1]} : vector<8x256xf32> to vector<8x128xf32>
    %350 = vector.extract_strided_slice %7 {offsets = [56, 0], sizes = [8, 128], strides = [1, 1]} : vector<64x128xf32> to vector<8x128xf32>
    %351 = arith.addf %349, %350 : vector<8x128xf32>
    %352 = arith.negf %351 : vector<8x128xf32>
    %353 = math.exp %352 : vector<8x128xf32>
    %cst_62 = arith.constant 1.000000e+00 : f32
    %354 = vector.broadcast %cst_62 : f32 to vector<8x128xf32>
    %355 = arith.addf %354, %353 : vector<8x128xf32>
    %356 = arith.divf %354, %355 : vector<8x128xf32>
    %357 = vector.extract_strided_slice %356 {offsets = [0, 0], sizes = [8, 32], strides = [1, 1]} : vector<8x128xf32> to vector<8x32xf32>
    %358 = vector.extract_strided_slice %356 {offsets = [0, 32], sizes = [8, 32], strides = [1, 1]} : vector<8x128xf32> to vector<8x32xf32>
    %359 = vector.extract_strided_slice %356 {offsets = [0, 64], sizes = [8, 32], strides = [1, 1]} : vector<8x128xf32> to vector<8x32xf32>
    %cst_63 = arith.constant 2.000000e+00 : f32
    %360 = vector.broadcast %cst_63 : f32 to vector<8x32xf32>
    %361 = arith.mulf %360, %359 : vector<8x32xf32>
    %cst_64 = arith.constant 1.000000e+00 : f32
    %362 = vector.broadcast %cst_64 : f32 to vector<8x32xf32>
    %363 = arith.subf %361, %362 : vector<8x32xf32>
    %364 = vector.extract_strided_slice %356 {offsets = [0, 96], sizes = [8, 32], strides = [1, 1]} : vector<8x128xf32> to vector<8x32xf32>
    %365 = arith.mulf %358, %316 : vector<8x32xf32>
    %366 = arith.mulf %357, %363 : vector<8x32xf32>
    %367 = arith.addf %365, %366 : vector<8x32xf32>
    %368 = math.tanh %367 : vector<8x32xf32>
    %369 = arith.mulf %364, %368 : vector<8x32xf32>
    %370 = arith.truncf %369 : vector<8x32xf32> to vector<8x32xbf16>
    %371 = vector.extract_strided_slice %348 {offsets = [0, 128], sizes = [8, 128], strides = [1, 1]} : vector<8x256xf32> to vector<8x128xf32>
    %372 = arith.negf %371 : vector<8x128xf32>
    %373 = math.exp %372 : vector<8x128xf32>
    %cst_65 = arith.constant 1.000000e+00 : f32
    %374 = vector.broadcast %cst_65 : f32 to vector<8x128xf32>
    %375 = arith.addf %374, %373 : vector<8x128xf32>
    %376 = arith.divf %374, %375 : vector<8x128xf32>
    %377 = vector.extract_strided_slice %376 {offsets = [0, 0], sizes = [8, 32], strides = [1, 1]} : vector<8x128xf32> to vector<8x32xf32>
    %378 = vector.extract_strided_slice %376 {offsets = [0, 32], sizes = [8, 32], strides = [1, 1]} : vector<8x128xf32> to vector<8x32xf32>
    %379 = vector.extract_strided_slice %376 {offsets = [0, 64], sizes = [8, 32], strides = [1, 1]} : vector<8x128xf32> to vector<8x32xf32>
    %cst_66 = arith.constant 2.000000e+00 : f32
    %380 = vector.broadcast %cst_66 : f32 to vector<8x32xf32>
    %381 = arith.mulf %380, %379 : vector<8x32xf32>
    %cst_67 = arith.constant 1.000000e+00 : f32
    %382 = vector.broadcast %cst_67 : f32 to vector<8x32xf32>
    %383 = arith.subf %381, %382 : vector<8x32xf32>
    %384 = vector.extract_strided_slice %376 {offsets = [0, 96], sizes = [8, 32], strides = [1, 1]} : vector<8x128xf32> to vector<8x32xf32>
    %385 = arith.mulf %378, %336 : vector<8x32xf32>
    %386 = arith.mulf %377, %383 : vector<8x32xf32>
    %387 = arith.addf %385, %386 : vector<8x32xf32>
    %388 = math.tanh %387 : vector<8x32xf32>
    %389 = arith.mulf %384, %388 : vector<8x32xf32>
    %390 = arith.truncf %389 : vector<8x32xf32> to vector<8x32xbf16>
    %c6_i32 = arith.constant 6 : i32
    %391 = vector.broadcast %c6_i32 : i32 to vector<8x1xi32>
    %392 = arith.cmpi eq, %2, %391 : vector<8x1xi32>
    %393 = vector.shape_cast %392 : vector<8x1xi1> to vector<8x1xi1>
    %394 = vector.broadcast %393 : vector<8x1xi1> to vector<8x32xi1>
    %395 = arith.select %394, %390, %344 : vector<8x32xi1>, vector<8x32xbf16>
    %396 = tpu.concatenate %370, %390 in 1 : vector<8x32xbf16>, vector<8x32xbf16> -> vector<8x64xbf16>
    %cst_68 = arith.constant dense<0.000000e+00> : vector<8x256xf32>
    %397 = tpu.matmul %396, %3, %cst_68 {dimension_numbers = #tpu.dot_dimension_numbers<[1], [0], [0], [1], [0, 0, 1, 1], [], []>} : vector<8x64xbf16>, vector<64x256xbf16>, vector<8x256xf32> -> vector<8x256xf32>
    %398 = vector.broadcast %4 : vector<1x256xf32> to vector<8x256xf32>
    %399 = arith.addf %397, %398 : vector<8x256xf32>
    %400 = vector.extract_strided_slice %399 {offsets = [0, 128], sizes = [8, 128], strides = [1, 1]} : vector<8x256xf32> to vector<8x128xf32>
    %401 = arith.negf %400 : vector<8x128xf32>
    %402 = math.exp %401 : vector<8x128xf32>
    %cst_69 = arith.constant 1.000000e+00 : f32
    %403 = vector.broadcast %cst_69 : f32 to vector<8x128xf32>
    %404 = arith.addf %403, %402 : vector<8x128xf32>
    %405 = arith.divf %403, %404 : vector<8x128xf32>
    %406 = vector.extract_strided_slice %405 {offsets = [0, 0], sizes = [8, 32], strides = [1, 1]} : vector<8x128xf32> to vector<8x32xf32>
    %407 = vector.extract_strided_slice %405 {offsets = [0, 32], sizes = [8, 32], strides = [1, 1]} : vector<8x128xf32> to vector<8x32xf32>
    %408 = vector.extract_strided_slice %405 {offsets = [0, 64], sizes = [8, 32], strides = [1, 1]} : vector<8x128xf32> to vector<8x32xf32>
    %cst_70 = arith.constant 2.000000e+00 : f32
    %409 = vector.broadcast %cst_70 : f32 to vector<8x32xf32>
    %410 = arith.mulf %409, %408 : vector<8x32xf32>
    %cst_71 = arith.constant 1.000000e+00 : f32
    %411 = vector.broadcast %cst_71 : f32 to vector<8x32xf32>
    %412 = arith.subf %410, %411 : vector<8x32xf32>
    %413 = vector.extract_strided_slice %405 {offsets = [0, 96], sizes = [8, 32], strides = [1, 1]} : vector<8x128xf32> to vector<8x32xf32>
    %414 = arith.mulf %407, %387 : vector<8x32xf32>
    %415 = arith.mulf %406, %412 : vector<8x32xf32>
    %416 = arith.addf %414, %415 : vector<8x32xf32>
    %417 = math.tanh %416 : vector<8x32xf32>
    %418 = arith.mulf %413, %417 : vector<8x32xf32>
    %419 = arith.truncf %418 : vector<8x32xf32> to vector<8x32xbf16>
    %c7_i32 = arith.constant 7 : i32
    %420 = vector.broadcast %c7_i32 : i32 to vector<8x1xi32>
    %421 = arith.cmpi eq, %2, %420 : vector<8x1xi32>
    %422 = vector.shape_cast %421 : vector<8x1xi1> to vector<8x1xi1>
    %423 = vector.broadcast %422 : vector<8x1xi1> to vector<8x32xi1>
    %424 = arith.select %423, %419, %395 : vector<8x32xi1>, vector<8x32xbf16>
    %c0_72 = arith.constant 0 : index
    %c0_73 = arith.constant 0 : index
    %425 = vector.load %arg6[%c0_72, %c0_73] : memref<32x128xbf16, #tpu.memory_space<vmem>>, vector<32x128xbf16>
    %cst_74 = arith.constant dense<0.000000e+00> : vector<8x128xf32>
    %426 = tpu.matmul %424, %425, %cst_74 {dimension_numbers = #tpu.dot_dimension_numbers<[1], [0], [0], [1], [0, 0, 1, 1], [], []>} : vector<8x32xbf16>, vector<32x128xbf16>, vector<8x128xf32> -> vector<8x128xf32>
    %c0_75 = arith.constant 0 : index
    %c0_76 = arith.constant 0 : index
    %427 = vector.load %arg7[%c0_75, %c0_76] : memref<1x128xf32, #tpu.memory_space<vmem>>, vector<1x128xf32>
    %428 = vector.broadcast %427 : vector<1x128xf32> to vector<8x128xf32>
    %429 = arith.addf %426, %428 : vector<8x128xf32>
    %430 = arith.negf %429 : vector<8x128xf32>
    %431 = math.exp %430 : vector<8x128xf32>
    %cst_77 = arith.constant 1.000000e+00 : f32
    %432 = vector.broadcast %cst_77 : f32 to vector<8x128xf32>
    %433 = arith.addf %432, %431 : vector<8x128xf32>
    %434 = arith.divf %432, %433 : vector<8x128xf32>
    %c0_78 = arith.constant 0 : index
    %c0_79 = arith.constant 0 : index
    %435 = vector.load %arg8[%c0_78, %c0_79] : memref<8x128xf32, #tpu.memory_space<vmem>>, vector<8x128xf32>
    tpu.vector_store %arg8[%c0_78, %c0_79], %434 {strides = array<i32>} : memref<8x128xf32, #tpu.memory_space<vmem>>, vector<8x128xf32>,
    return
  }
  func.func @transform_0(%arg0: i32) -> (i32, i32) {
    %c0_i32 = arith.constant 0 : i32
    %c0_i32_0 = arith.constant 0 : i32
    return %arg0, %c0_i32 : i32, i32
  }
  func.func @transform_1(%arg0: i32) -> (i32, i32) {
    %c0_i32 = arith.constant 0 : i32
    %c0_i32_0 = arith.constant 0 : i32
    return %arg0, %c0_i32 : i32, i32
  }
  func.func @transform_2(%arg0: i32) -> (i32, i32) {
    %c0_i32 = arith.constant 0 : i32
    %c0_i32_0 = arith.constant 0 : i32
    %c0_i32_1 = arith.constant 0 : i32
    return %c0_i32, %c0_i32_0 : i32, i32
  }
  func.func @transform_3(%arg0: i32) -> (i32, i32) {
    %c0_i32 = arith.constant 0 : i32
    %c0_i32_0 = arith.constant 0 : i32
    %c0_i32_1 = arith.constant 0 : i32
    return %c0_i32, %c0_i32_0 : i32, i32
  }
  func.func @transform_4(%arg0: i32) -> (i32, i32) {
    %c0_i32 = arith.constant 0 : i32
    %c0_i32_0 = arith.constant 0 : i32
    %c0_i32_1 = arith.constant 0 : i32
    return %c0_i32, %c0_i32_0 : i32, i32
  }
  func.func @transform_5(%arg0: i32) -> (i32, i32) {
    %c0_i32 = arith.constant 0 : i32
    %c0_i32_0 = arith.constant 0 : i32
    %c0_i32_1 = arith.constant 0 : i32
    return %c0_i32, %c0_i32_0 : i32, i32
  }
  func.func @transform_6(%arg0: i32) -> (i32, i32) {
    %c0_i32 = arith.constant 0 : i32
    %c0_i32_0 = arith.constant 0 : i32
    %c0_i32_1 = arith.constant 0 : i32
    return %c0_i32, %c0_i32_0 : i32, i32
  }
  func.func @transform_7(%arg0: i32) -> (i32, i32) {
    %c0_i32 = arith.constant 0 : i32
    %c0_i32_0 = arith.constant 0 : i32
    return %arg0, %c0_i32 : i32, i32
  }
}

</mosaic_0001>

<bundles_post_ra>
// kernel: lstm_model_forward.1
= control target key start
LH: loop header
LB: loop body
LE: loop exit
PB: predicated region body
PF: predicated region fallthrough
CT: control target
= control target key end

     0   :  { %v1563_v2 = vmov 0   ;;  %vm163_vm4 = vcmask 261120   ;;  %vm194_vm5 = vcmask 523264   ;;  %s2002_s2 = inlined_call_operand.vmem [shape: bf16[128,128], index: 2, kind: input, shape index: {}]   ;;  %s2003_s3 = inlined_call_operand.vmem [shape: bf16[64,256], index: 3, kind: input, shape index: {}]   ;;  %s2004_s0 = inlined_call_operand.vmem [shape: bf16[64,128], index: 0, kind: input, shape index: {}]   ;;  %s2005_s4 = inlined_call_operand.vmem [shape: f32[1,256], index: 4, kind: input, shape index: {}]   ;;  %s2006_s1 = inlined_call_operand.vmem [shape: s32[8,1], index: 1, kind: input, shape index: {}]   ;;  %s2007_s5 = inlined_call_operand.vmem [shape: bf16[32,128], index: 5, kind: input, shape index: {}]   ;;  %s2008_s6 = inlined_call_operand.vmem [shape: f32[1,128], index: 6, kind: input, shape index: {}]   ;;  %s2009_s7 = inlined_call_operand.vmem [shape: f32[8,128], index: 7, kind: output, shape index: {}]  }
   0x1   :  { %v1453_v0 = vld [vmem:[%s2002_s2 + $0x38] sm:$0xff]  ;;  %v1359_v1 = vld [vmem:[%s2003_s3 + $0x30] sm:$0xf]  ;;  %1459 = vset.pattern.permute.xlu2 %v1563_v2  ;;  %1460 = vset.pattern.permute.xlu0 %v1563_v2  ;;  %v1355_v4 = vld [vmem:[%s2003_s3 + $0x20] sm:$0xf] }
   0x2   :  { %v1441_v3 = vld [vmem:[%s2003_s3 + $0x34] sm:$0xf0]  ;;  %1461 = vset.pattern.permute.xlu1 %v1563_v2  ;;  %134 = vmatpush.bf16.msra.mxu0 %v1453_v0  ;;  %v1452_v5 = vld [vmem:[%s2002_s2 + $0x30] sm:$0xff]  ;;  %v1439_v7 = vld [vmem:[%s2003_s3 + $0x24] sm:$0xf0] }
   0x3   :  { %v1624_v6 = vor.u32 %v1441_v3, %v1359_v1  ;;  %v1630_v8 = vor.u32 %v1439_v7, %v1355_v4  ;;  %v1351_v9 = vld [vmem:[%s2003_s3 + $0x10] sm:$0xf]  ;;  %v1437_v10 = vld [vmem:[%s2003_s3 + $0x14] sm:$0xf0]  ;;  %v1451_v11 = vld [vmem:[%s2002_s2 + $0x28] sm:$0xff] }
   0x4   :  { %v1643_v12 = vor.u32 %v1437_v10, %v1351_v9  ;;  %v1347_v13 = vld [vmem:[%s2003_s3] sm:$0xf]  ;;  %v1435_v14 = vld [vmem:[%s2003_s3 + $0x4] sm:$0xf0]  ;;  %v1449_v17 = vld [vmem:[%s2002_s2 + $0x18] sm:$0xff] }
   0x5   :  { %201 = vmatpush.bf16.msra.mxu1 %v1624_v6  ;;  %279 = vmatpush.bf16.msra.mxu2 %v1624_v6  ;;  %v1450_v15 = vld [vmem:[%s2002_s2 + $0x20] sm:$0xff]  ;;  %v1656_v16 = vor.u32 %v1435_v14, %v1347_v13  ;;  %v1448_v18 = vld [vmem:[%s2002_s2 + $0x10] sm:$0xff]  ;;  %v1447_v19 = vld [vmem:[%s2002_s2 + $0x8] sm:$0xff] }
   0x6   :  { %135 = vmatpush.bf16.msra.mxu0 %v1452_v5  ;;  %v1446_v20 = vld [vmem:[%s2002_s2] sm:$0xff]  ;;  %s1564_s2 = smov 64   ;;  %v1440_v50 = vld [vmem:[%s2003_s3 + $0x34] sm:$0xf]  ;;  %v1375_v51 = vld [vmem:[%s2003_s3 + $0x38] sm:$0xf0] }
   0x7   :  { %v1442_v21 = vld [vmem:[%s2004_s0] sm:$0xff]  ;;  %v1705_v53 = vor.u32 %v1440_v50, %v1375_v51  ;;  %v1371_v54 = vld [vmem:[%s2003_s3 + $0x28] sm:$0xf0]  ;;  %v1436_v56 = vld [vmem:[%s2003_s3 + $0x14] sm:$0xf] }
   0x8   :  { %v1684_v23 = vld [vmem:[%s2005_s4] sm:$0x3]  ;;  %s1565_s4 = smov 32   ;;  %v1438_v52 = vld [vmem:[%s2003_s3 + $0x24] sm:$0xf] }
   0x9   :  { %202 = vmatpush.bf16.msra.mxu1 %v1630_v8  ;;  %280 = vmatpush.bf16.msra.mxu2 %v1630_v8  ;;  %v1687_v24 = vperm.slane %v1684_v23, 0  ;;  %v1711_v55 = vor.u32 %v1438_v52, %v1371_v54  ;;  %v1367_v57 = vld [vmem:[%s2003_s3 + $0x18] sm:$0xf0]  ;;  %v1434_v59 = vld [vmem:[%s2003_s3 + $0x4] sm:$0xf]  ;;  %v1761_v7 = vperm.slane %v1684_v23, 1 }
   0xa   :  { %136 = vmatpush.bf16.msra.mxu0 %v1451_v11  ;;  %292 = vmatpush.bf16.msra.mxu3 %v1705_v53  ;;  %v1723_v58 = vor.u32 %v1436_v56, %v1367_v57  ;;  %v1363_v60 = vld [vmem:[%s2003_s3 + $0x8] sm:$0xf0] }
   0xb   :  { %v1735_v61 = vor.u32 %v1434_v59, %v1363_v60 }
   0xd   :  { %203 = vmatpush.bf16.msra.mxu1 %v1643_v12  ;;  %281 = vmatpush.bf16.msra.mxu2 %v1643_v12 }
   0xe   :  { %137 = vmatpush.bf16.msra.mxu0 %v1450_v15  ;;  %293 = vmatpush.bf16.msra.mxu3 %v1711_v55 }
  0x11   :  { %204 = vmatpush.bf16.msra.mxu1 %v1656_v16  ;;  %282 = vmatpush.bf16.msra.mxu2 %v1656_v16 }
  0x12   :  { %138 = vmatpush.bf16.msra.mxu0 %v1449_v17  ;;  %294 = vmatpush.bf16.msra.mxu3 %v1723_v58 }
  0x14   :  { %205 = vmatmul.bf16.vlgmr.msra.gmra.mxu1 %v1563_v2 }
  0x15   :  { %407 = vmatpush.bf16.msrb.mxu1 %v1624_v6  ;;  %420 = vmatpush.bf16.msrb.mxu2 %v1705_v53 }
  0x16   :  { %139 = vmatpush.bf16.msra.mxu0 %v1448_v18  ;;  %295 = vmatpush.bf16.msra.mxu3 %v1735_v61 }
  0x19   :  { %408 = vmatpush.bf16.msrb.mxu1 %v1630_v8  ;;  %421 = vmatpush.bf16.msrb.mxu2 %v1711_v55 }
  0x1a   :  { %140 = vmatpush.bf16.msra.mxu0 %v1447_v19  ;;  %535 = vmatpush.bf16.msrb.mxu3 %v1624_v6 }
  0x1d   :  { %409 = vmatpush.bf16.msrb.mxu1 %v1643_v12  ;;  %422 = vmatpush.bf16.msrb.mxu2 %v1723_v58 }
  0x1e   :  { %141 = vmatpush.bf16.msra.mxu0 %v1446_v20  ;;  %536 = vmatpush.bf16.msrb.mxu3 %v1630_v8 }
  0x21   :  { %410 = vmatpush.bf16.msrb.mxu1 %v1656_v16  ;;  %142 = vmatmul.bf16.vlgmr.msra.gmra.mxu0 %v1442_v21 }
  0x22   :  { %1175 = vmatpush.bf16.msrb.mxu0 %v1705_v53  ;;  %423 = vmatpush.bf16.msrb.mxu2 %v1735_v61 }
  0x23   :  { %537 = vmatpush.bf16.msrb.mxu3 %v1643_v12 }
  0x25   :  { %548 = vmatpush.bf16.msra.mxu1 %v1705_v53 }
  0x26   :  { %1176 = vmatpush.bf16.msrb.mxu0 %v1711_v55 }
  0x27   :  { %538 = vmatpush.bf16.msrb.mxu3 %v1656_v16 }
  0x29   :  { %549 = vmatpush.bf16.msra.mxu1 %v1711_v55 }
  0x2a   :  { %1177 = vmatpush.bf16.msrb.mxu0 %v1723_v58 }
  0x2d   :  { %550 = vmatpush.bf16.msra.mxu1 %v1723_v58 }
  0x2e   :  { %1178 = vmatpush.bf16.msrb.mxu0 %v1735_v61 }
  0x31   :  { %551 = vmatpush.bf16.msra.mxu1 %v1735_v61 }
  0x91   :  { %v206_v22 = vpop.f32.mrf.mxu1 }
  0x92   :  { %v207_v26 = vadd.f32 %v206_v22, %v1687_v24 }
  0x99   :  { %v208_v25 = vpop.f32.mrf.mxu1 }
  0x9e   :  { %v143_v27 = vpop.f32.mrf.mxu0 }
  0x9f   :  { %v210_v28 = vadd.f32 %v207_v26, %v143_v27 }
  0xa1   :  { %v1361_v29 = vmul.f32 -1.442695, %v210_v28 }
  0xa3   :  { %1463 = vpow2.f32 %v1361_v29 }
  0xa6   :  { %v145_v14 = vpop.f32.mrf.mxu0 }
  0xa9   :  { %v1464_v30 = vpop.eup %1463 }
  0xaa   :  { %v214_v31 = vadd.f32 1.0, %v1464_v30 }
  0xac   :  { %1465 = vrcp.f32 %v214_v31  ;;  %v226_v35 = vand.u32 2147483648, %v214_v31  ;;  %v224_v37 = vand.u32 2147483647, %v214_v31  ;;  %vm220_vm1 = vweird.f32 %v214_v31 }
  0xae   :  { %v227_v39 = vor.u32 1.1754944e-38, %v226_v35  ;;  %vm225_vm3 = vcmp.eq.f32.partialorder %v224_v37, 8.507059e+37 }
  0xb2   :  { %v1466_v32 = vpop.eup %1465 }
  0xb3   :  { %v216_v33 = vmul.f32 %v1466_v32, %v214_v31  ;;  %vm221_vm0 = vweird.f32 %v1466_v32 }
  0xb4   :  { %vm222_vm2 = vmor %vm220_vm1, %vm221_vm0 }
  0xb5   :  { %v217_v34 = vsub.f32 1.0, %v216_v33 }
  0xb7   :  { %v218_v36 = vmul.f32 %v1466_v32, %v217_v34 }
  0xb9   :  { %v219_v38 = vadd.f32 %v1466_v32, %v218_v36 }
  0xbb   :  { %v223_v40 = vsel %vm222_vm2, %v1466_v32, %v219_v38 }
  0xbc   :  { %v228_v41 = vsel %vm225_vm3, %v227_v39, %v223_v40 }
  0xbd   :  { %v230_v42 = vmul.f32 2.0, %v228_v41  ;;  %v232_v46 = vmul.f32 0.0, %v228_v41 }
  0xbf   :  { %v1362_v43 = vadd.f32 -1.0, %v230_v42 }
  0xc1   :  { %234 = vrot.lane.b32.xlu0 %v1362_v43, %s1564_s2 }
 0x133   :  { %v235_v44 = vpop.permute.xlu0 %234 }
 0x134   :  { %v237_v45 = vmul.f32 %v235_v44, %v228_v41 }
 0x136   :  { %239 = vrot.lane.b32.xlu0 %v237_v45, %s1565_s4 }
 0x1a8   :  { %v240_v47 = vpop.permute.xlu0 %239 }
 0x1a9   :  { %v1692_v48 = vadd.f32 %v240_v47, %v232_v46 }
 0x1ab   :  { %1467 = vtanh.f32 %v1692_v48 }
 0x1b1   :  { %v1468_v49 = vpop.eup %1467 }
 0x1b2   :  { %245 = vrot.lane.b32.xlu1 %v1468_v49, %s1564_s2 }
 0x224   :  { %v246_v62 = vpop.permute.xlu1 %245 }
 0x225   :  { %v248_v63 = vmul.f32 %v246_v62, %v228_v41 }
 0x227   :  { %v249_v0 = vpack.c.bf16 %v248_v63, %v248_v63 }
 0x229   :  { %v251_v1 = vunpack.c.l.b16 %v249_v0 }
 0x22b   :  { %v252_v3 = vpack.c.b16 %v251_v1, %v251_v1 }
 0x22d   :  { %253 = vrot.lane.b32.xlu1 %v252_v3, %s1565_s4 }
 0x29f   :  { %v254_v4 = vpop.permute.xlu1 %253 }
 0x2a0   :  { %v256_v5 = vsel %vm163_vm4, %v254_v4, 0 }
 0x2a1   :  { %1379 = vmatmul.msk.bf16.vlgmr.msra.gmra.mxu2 %vm194_vm5, %v256_v5  ;;  %1380 = vmatmul.msk.bf16.vlgmr.msra.gmra.mxu3 %vm194_vm5, %v256_v5 }
 0x2a2   :  { %663 = vmatpush.bf16.msra.mxu2 %v1624_v6  ;;  %676 = vmatpush.bf16.msra.mxu3 %v1705_v53 }
 0x2a6   :  { %664 = vmatpush.bf16.msra.mxu2 %v1630_v8  ;;  %677 = vmatpush.bf16.msra.mxu3 %v1711_v55 }
 0x2aa   :  { %665 = vmatpush.bf16.msra.mxu2 %v1643_v12  ;;  %678 = vmatpush.bf16.msra.mxu3 %v1723_v58 }
 0x2ae   :  { %666 = vmatpush.bf16.msra.mxu2 %v1656_v16  ;;  %679 = vmatpush.bf16.msra.mxu3 %v1735_v61 }
 0x324   :  { %v284_v9 = vpop.f32.mrf.mxu2  ;;  %v297_v10 = vpop.f32.mrf.mxu3 }
 0x325   :  { %v285_v11 = vadd.f32 %v284_v9, %v1687_v24  ;;  %v298_v13 = vadd.f32 %v297_v10, %v1761_v7 }
 0x327   :  { %v301_v15 = vadd.f32 %v285_v11, %v145_v14  ;;  %v1383_v17 = vmul.f32 -1.442695, %v298_v13 }
 0x329   :  { %v1381_v18 = vmul.f32 -1.442695, %v301_v15  ;;  %1469 = vpow2.f32 %v1383_v17 }
 0x32b   :  { %1471 = vpow2.f32 %v1381_v18  ;;  %v1443_v18 = vld [vmem:[%s2004_s0 + $0x8] sm:$0xff] }
 0x32c   :  { %v286_v19 = vpop.f32.mrf.mxu2  ;;  %v299_v20 = vpop.f32.mrf.mxu3  ;;  %147 = vmatmul.bf16.gmra.mxu0 %v1443_v18 }
 0x32f   :  { %v1470_v21 = vpop.eup %1469 }
 0x330   :  { %v344_v22 = vadd.f32 1.0, %v1470_v21 }
 0x331   :  { %v1472_v25 = vpop.eup %1471 }
 0x332   :  { %v305_v26 = vadd.f32 1.0, %v1472_v25  ;;  %1473 = vrcp.f32 %v344_v22  ;;  %v356_v39 = vand.u32 2147483648, %v344_v22  ;;  %vm350_vm11 = vweird.f32 %v344_v22 }
 0x333   :  { %v354_v41 = vand.u32 2147483647, %v344_v22 }
 0x334   :  { %1475 = vrcp.f32 %v305_v26  ;;  %v317_v33 = vand.u32 2147483648, %v305_v26  ;;  %v315_v35 = vand.u32 2147483647, %v305_v26  ;;  %vm311_vm7 = vweird.f32 %v305_v26 }
 0x335   :  { %v357_v45 = vor.u32 1.1754944e-38, %v356_v39  ;;  %vm355_vm13 = vcmp.eq.f32.partialorder %v354_v41, 8.507059e+37 }
 0x336   :  { %v318_v38 = vor.u32 1.1754944e-38, %v317_v33  ;;  %vm316_vm10 = vcmp.eq.f32.partialorder %v315_v35, 8.507059e+37 }
 0x338   :  { %v1474_v23 = vpop.eup %1473 }
 0x339   :  { %v346_v27 = vmul.f32 %v1474_v23, %v344_v22  ;;  %vm351_vm8 = vweird.f32 %v1474_v23 }
 0x33a   :  { %v1476_v28 = vpop.eup %1475  ;;  %vm352_vm12 = vmor %vm350_vm11, %vm351_vm8 }
 0x33b   :  { %v347_v29 = vsub.f32 1.0, %v346_v27  ;;  %v307_v30 = vmul.f32 %v1476_v28, %v305_v26  ;;  %vm312_vm6 = vweird.f32 %v1476_v28 }
 0x33c   :  { %vm313_vm9 = vmor %vm311_vm7, %vm312_vm6 }
 0x33d   :  { %v308_v31 = vsub.f32 1.0, %v307_v30  ;;  %v348_v32 = vmul.f32 %v1474_v23, %v347_v29 }
 0x33f   :  { %v309_v34 = vmul.f32 %v1476_v28, %v308_v31  ;;  %v349_v37 = vadd.f32 %v1474_v23, %v348_v32 }
 0x341   :  { %v310_v36 = vadd.f32 %v1476_v28, %v309_v34  ;;  %v353_v44 = vsel %vm352_vm12, %v1474_v23, %v349_v37 }
 0x342   :  { %v358_v47 = vsel %vm355_vm13, %v357_v45, %v353_v44 }
 0x343   :  { %v314_v40 = vsel %vm313_vm9, %v1476_v28, %v310_v36  ;;  %v360_v49 = vmul.f32 2.0, %v358_v47  ;;  %v362_v62 = vmul.f32 0.0, %v358_v47 }
 0x344   :  { %v319_v42 = vsel %vm316_vm10, %v318_v38, %v314_v40 }
 0x345   :  { %v321_v43 = vmul.f32 2.0, %v319_v42  ;;  %v1384_v50 = vadd.f32 -1.0, %v360_v49  ;;  %v323_v57 = vmul.f32 %v319_v42, %v1692_v48 }
 0x347   :  { %v1382_v46 = vadd.f32 -1.0, %v321_v43 }
 0x349   :  { %325 = vrot.lane.b32.xlu2 %v1382_v46, %s1564_s2 }
 0x351   :  { %364 = vrot.lane.b32.xlu2 %v1384_v50, %s1564_s2 }
 0x3a3   :  { %v326_v51 = vpop.permute.xlu2 %325 }
 0x3a4   :  { %v328_v52 = vmul.f32 %v326_v51, %v319_v42 }
 0x3a6   :  { %330 = vrot.lane.b32.xlu0 %v328_v52, %s1565_s4 }
 0x3a9   :  { %v148_v26 = vpop.f32.mrf.mxu0 }
 0x3ab   :  { %v365_v54 = vpop.permute.xlu2 %364 }
 0x3ac   :  { %v367_v56 = vmul.f32 %v365_v54, %v358_v47 }
 0x3ae   :  { %369 = vrot.lane.b32.xlu1 %v367_v56, %s1565_s4 }
 0x418   :  { %v331_v59 = vpop.permute.xlu0 %330 }
 0x419   :  { %v1770_v60 = vadd.f32 %v331_v59, %v323_v57 }
 0x41b   :  { %1477 = vtanh.f32 %v1770_v60 }
 0x420   :  { %v370_v63 = vpop.permute.xlu1 %369 }
 0x421   :  { %v1478_v0 = vpop.eup %1477  ;;  %v1773_v1 = vadd.f32 %v370_v63, %v362_v62 }
 0x422   :  { %336 = vrot.lane.b32.xlu2 %v1478_v0, %s1564_s2 }
 0x423   :  { %1479 = vtanh.f32 %v1773_v1 }
 0x429   :  { %v1480_v3 = vpop.eup %1479 }
 0x42a   :  { %375 = vrot.lane.b32.xlu0 %v1480_v3, %s1564_s2 }
 0x47c   :  { %v337_v4 = vpop.permute.xlu2 %336 }
 0x47d   :  { %v339_v5 = vmul.f32 %v337_v4, %v319_v42 }
 0x47f   :  { %v340_v48 = vpack.c.bf16 %v339_v5, %v339_v5 }
 0x481   :  { %v389_v9 = vunpack.c.l.b16 %v340_v48 }
 0x483   :  { %v390_v10 = vpack.c.b16 %v389_v9, %v389_v9 }
 0x485   :  { %391 = vrot.lane.b32.xlu1 %v390_v10, %s1565_s4 }
 0x49c   :  { %v376_v11 = vpop.permute.xlu0 %375 }
 0x49d   :  { %v378_v13 = vmul.f32 %v376_v11, %v358_v47 }
 0x49f   :  { %v1779_v14 = vpack.c.bf16 %v378_v13, %v378_v13 }
 0x4a1   :  { %v394_v15 = vunpack.c.l.b16 %v1779_v14 }
 0x4a3   :  { %v395_v17 = vpack.c.b16 %v394_v15, %v394_v15 }
 0x4a5   :  { %396 = vrot.lane.b32.xlu2 %v395_v17, %s1564_s2 }
 0x4f7   :  { %v392_v19 = vpop.permute.xlu1 %391 }
 0x4ff   :  { %v397_v20 = vpop.permute.xlu2 %396 }
 0x500   :  { %v400_v21 = vsel %vm163_vm4, %v392_v19, %v397_v20 }
 0x501   :  { %1385 = vmatmul.msk.bf16.vlgmr.msrb.gmra.mxu1 %vm194_vm5, %v400_v21  ;;  %1386 = vmatmul.msk.bf16.vlgmr.msrb.gmra.mxu2 %vm194_vm5, %v400_v21 }
 0x502   :  { %804 = vmatpush.bf16.msrb.mxu2 %v1705_v53  ;;  %791 = vmatpush.bf16.msrb.mxu1 %v1624_v6 }
 0x506   :  { %805 = vmatpush.bf16.msrb.mxu2 %v1711_v55  ;;  %792 = vmatpush.bf16.msrb.mxu1 %v1630_v8 }
 0x50a   :  { %806 = vmatpush.bf16.msrb.mxu2 %v1723_v58  ;;  %793 = vmatpush.bf16.msrb.mxu1 %v1643_v12 }
 0x50e   :  { %807 = vmatpush.bf16.msrb.mxu2 %v1735_v61  ;;  %794 = vmatpush.bf16.msrb.mxu1 %v1656_v16 }
 0x57e   :  { %v412_v22 = vpop.f32.mrf.mxu1 }
 0x57f   :  { %v413_v25 = vadd.f32 %v412_v22, %v1687_v24 }
 0x581   :  { %v429_v23 = vadd.f32 %v413_v25, %v148_v26 }
 0x583   :  { %v1387_v27 = vmul.f32 -1.442695, %v429_v23 }
 0x584   :  { %v425_v28 = vpop.f32.mrf.mxu2 }
 0x585   :  { %1481 = vpow2.f32 %v1387_v27  ;;  %v426_v29 = vadd.f32 %v425_v28, %v1761_v7 }
 0x586   :  { %v414_v30 = vpop.f32.mrf.mxu1 }
 0x587   :  { %v1389_v31 = vmul.f32 -1.442695, %v426_v29 }
 0x589   :  { %1483 = vpow2.f32 %v1389_v31 }
 0x58b   :  { %v1482_v32 = vpop.eup %1481 }
 0x58c   :  { %v433_v33 = vadd.f32 1.0, %v1482_v32  ;;  %v427_v34 = vpop.f32.mrf.mxu2 }
 0x58e   :  { %1485 = vrcp.f32 %v433_v33  ;;  %v443_v41 = vand.u32 2147483647, %v433_v33  ;;  %v445_v42 = vand.u32 2147483648, %v433_v33  ;;  %vm439_vm15 = vweird.f32 %v433_v33 }
 0x58f   :  { %v1484_v35 = vpop.eup %1483 }
 0x590   :  { %v472_v36 = vadd.f32 1.0, %v1484_v35  ;;  %vm444_vm1 = vcmp.eq.f32.partialorder %v443_v41, 8.507059e+37  ;;  %v446_v47 = vor.u32 1.1754944e-38, %v445_v42 }
 0x592   :  { %1487 = vrcp.f32 %v472_v36  ;;  %v484_v49 = vand.u32 2147483648, %v472_v36  ;;  %v482_v52 = vand.u32 2147483647, %v472_v36  ;;  %vm478_vm3 = vweird.f32 %v472_v36 }
 0x594   :  { %v1486_v37 = vpop.eup %1485  ;;  %v485_v59 = vor.u32 1.1754944e-38, %v484_v49  ;;  %vm483_vm7 = vcmp.eq.f32.partialorder %v482_v52, 8.507059e+37 }
 0x595   :  { %v435_v38 = vmul.f32 %v1486_v37, %v433_v33  ;;  %vm440_vm14 = vweird.f32 %v1486_v37 }
 0x596   :  { %vm441_vm0 = vmor %vm439_vm15, %vm440_vm14 }
 0x597   :  { %v436_v39 = vsub.f32 1.0, %v435_v38 }
 0x598   :  { %v1488_v40 = vpop.eup %1487 }
 0x599   :  { %v474_v43 = vmul.f32 %v1488_v40, %v472_v36  ;;  %v437_v44 = vmul.f32 %v1486_v37, %v436_v39  ;;  %vm479_vm2 = vweird.f32 %v1488_v40  ;;  %v150_v39 = vpop.f32.mrf.mxu0 }
 0x59a   :  { %vm480_vm6 = vmor %vm478_vm3, %vm479_vm2 }
 0x59b   :  { %v475_v45 = vsub.f32 1.0, %v474_v43  ;;  %v438_v46 = vadd.f32 %v1486_v37, %v437_v44 }
 0x59d   :  { %v442_v50 = vsel %vm441_vm0, %v1486_v37, %v438_v46  ;;  %v476_v51 = vmul.f32 %v1488_v40, %v475_v45 }
 0x59e   :  { %v447_v54 = vsel %vm444_vm1, %v446_v47, %v442_v50 }
 0x59f   :  { %v449_v56 = vmul.f32 2.0, %v447_v54  ;;  %v477_v57 = vadd.f32 %v1488_v40, %v476_v51  ;;  %v451_v11 = vmul.f32 %v447_v54, %v1770_v60 }
 0x5a1   :  { %v1388_v62 = vadd.f32 -1.0, %v449_v56  ;;  %v481_v63 = vsel %vm480_vm6, %v1488_v40, %v477_v57 }
 0x5a2   :  { %v486_v0 = vsel %vm483_vm7, %v485_v59, %v481_v63 }
 0x5a3   :  { %453 = vrot.lane.b32.xlu0 %v1388_v62, %s1564_s2  ;;  %v488_v3 = vmul.f32 2.0, %v486_v0  ;;  %v490_v18 = vmul.f32 %v486_v0, %v1773_v1 }
 0x5a5   :  { %v1390_v4 = vadd.f32 -1.0, %v488_v3 }
 0x5a7   :  { %492 = vrot.lane.b32.xlu1 %v1390_v4, %s1564_s2 }
 0x615   :  { %v454_v5 = vpop.permute.xlu0 %453 }
 0x616   :  { %v456_v48 = vmul.f32 %v454_v5, %v447_v54 }
 0x618   :  { %458 = vrot.lane.b32.xlu2 %v456_v48, %s1565_s4 }
 0x619   :  { %v493_v9 = vpop.permute.xlu1 %492 }
 0x61a   :  { %v495_v10 = vmul.f32 %v493_v9, %v486_v0 }
 0x61c   :  { %497 = vrot.lane.b32.xlu0 %v495_v10, %s1565_s4 }
 0x672   :  { %v459_v13 = vpop.permute.xlu2 %458 }
 0x673   :  { %v1804_v15 = vadd.f32 %v459_v13, %v451_v11 }
 0x675   :  { %1489 = vtanh.f32 %v1804_v15 }
 0x67b   :  { %v1490_v17 = vpop.eup %1489 }
 0x67c   :  { %464 = vrot.lane.b32.xlu1 %v1490_v17, %s1564_s2 }
 0x68e   :  { %v498_v19 = vpop.permute.xlu0 %497 }
 0x68f   :  { %v1809_v20 = vadd.f32 %v498_v19, %v490_v18 }
 0x691   :  { %1491 = vtanh.f32 %v1809_v20 }
 0x697   :  { %v1492_v21 = vpop.eup %1491 }
 0x698   :  { %503 = vrot.lane.b32.xlu2 %v1492_v21, %s1564_s2 }
 0x6ee   :  { %v465_v22 = vpop.permute.xlu1 %464 }
 0x6ef   :  { %v467_v60 = vmul.f32 %v465_v22, %v447_v54 }
 0x6f1   :  { %v468_v25 = vpack.c.bf16 %v467_v60, %v467_v60 }
 0x6f2   :  { %v504_v26 = vpop.permute.xlu2 %503 }
 0x6f3   :  { %v517_v23 = vunpack.c.l.b16 %v468_v25  ;;  %v506_v27 = vmul.f32 %v504_v26, %v486_v0 }
 0x6f5   :  { %v518_v28 = vpack.c.b16 %v517_v23, %v517_v23  ;;  %v1813_v29 = vpack.c.bf16 %v506_v27, %v506_v27 }
 0x6f7   :  { %v522_v30 = vunpack.c.l.b16 %v1813_v29  ;;  %519 = vrot.lane.b32.xlu0 %v518_v28, %s1565_s4 }
 0x6f9   :  { %v523_v1 = vpack.c.b16 %v522_v30, %v522_v30 }
 0x6fb   :  { %524 = vrot.lane.b32.xlu1 %v523_v1, %s1564_s2 }
 0x769   :  { %v520_v31 = vpop.permute.xlu0 %519 }
 0x76d   :  { %v525_v32 = vpop.permute.xlu1 %524 }
 0x76e   :  { %v528_v33 = vsel %vm163_vm4, %v520_v31, %v525_v32 }
 0x76f   :  { %1391 = vmatmul.msk.bf16.vlgmr.msrb.gmra.mxu3 %vm194_vm5, %v528_v33  ;;  %1392 = vmatmul.msk.bf16.vlgmr.msra.gmra.mxu1 %vm194_vm5, %v528_v33 }
 0x770   :  { %932 = vmatpush.bf16.msra.mxu1 %v1705_v53  ;;  %919 = vmatpush.bf16.msrb.mxu3 %v1624_v6 }
 0x774   :  { %933 = vmatpush.bf16.msra.mxu1 %v1711_v55  ;;  %920 = vmatpush.bf16.msrb.mxu3 %v1630_v8 }
 0x778   :  { %934 = vmatpush.bf16.msra.mxu1 %v1723_v58  ;;  %921 = vmatpush.bf16.msrb.mxu3 %v1643_v12 }
 0x77c   :  { %935 = vmatpush.bf16.msra.mxu1 %v1735_v61  ;;  %922 = vmatpush.bf16.msrb.mxu3 %v1656_v16 }
 0x7ec   :  { %v553_v34 = vpop.f32.mrf.mxu1 }
 0x7ed   :  { %v554_v35 = vadd.f32 %v553_v34, %v1761_v7 }
 0x7ef   :  { %v1395_v36 = vmul.f32 -1.442695, %v554_v35 }
 0x7f1   :  { %1493 = vpow2.f32 %v1395_v36 }
 0x7f2   :  { %v540_v37 = vpop.f32.mrf.mxu3 }
 0x7f3   :  { %v541_v38 = vadd.f32 %v540_v37, %v1687_v24 }
 0x7f4   :  { %v555_v40 = vpop.f32.mrf.mxu1 }
 0x7f5   :  { %v557_v41 = vadd.f32 %v541_v38, %v150_v39 }
 0x7f7   :  { %v1494_v42 = vpop.eup %1493  ;;  %v1393_v43 = vmul.f32 -1.442695, %v557_v41 }
 0x7f8   :  { %v600_v44 = vadd.f32 1.0, %v1494_v42 }
 0x7f9   :  { %1495 = vpow2.f32 %v1393_v43  ;;  %v1444_v43 = vld [vmem:[%s2004_s0 + $0x10] sm:$0xff] }
 0x7fa   :  { %1497 = vrcp.f32 %v600_v44  ;;  %v542_v45 = vpop.f32.mrf.mxu3  ;;  %v612_v52 = vand.u32 2147483648, %v600_v44  ;;  %v610_v56 = vand.u32 2147483647, %v600_v44  ;;  %vm606_vm9 = vweird.f32 %v600_v44  ;;  %152 = vmatmul.bf16.gmra.mxu0 %v1444_v43 }
 0x7fc   :  { %v613_v62 = vor.u32 1.1754944e-38, %v612_v52  ;;  %vm611_vm11 = vcmp.eq.f32.partialorder %v610_v56, 8.507059e+37 }
 0x7ff   :  { %v1496_v46 = vpop.eup %1495 }
 0x800   :  { %v1498_v47 = vpop.eup %1497  ;;  %v561_v49 = vadd.f32 1.0, %v1496_v46 }
 0x801   :  { %v602_v50 = vmul.f32 %v1498_v47, %v600_v44  ;;  %vm607_vm8 = vweird.f32 %v1498_v47 }
 0x802   :  { %1499 = vrcp.f32 %v561_v49  ;;  %vm608_vm10 = vmor %vm606_vm9, %vm607_vm8  ;;  %v573_v48 = vand.u32 2147483648, %v561_v49  ;;  %v571_v11 = vand.u32 2147483647, %v561_v49  ;;  %vm567_vm13 = vweird.f32 %v561_v49 }
 0x803   :  { %v603_v51 = vsub.f32 1.0, %v602_v50 }
 0x804   :  { %v574_v17 = vor.u32 1.1754944e-38, %v573_v48  ;;  %vm572_vm15 = vcmp.eq.f32.partialorder %v571_v11, 8.507059e+37 }
 0x805   :  { %v604_v54 = vmul.f32 %v1498_v47, %v603_v51 }
 0x807   :  { %v605_v57 = vadd.f32 %v1498_v47, %v604_v54 }
 0x808   :  { %v1500_v59 = vpop.eup %1499 }
 0x809   :  { %v563_v63 = vmul.f32 %v1500_v59, %v561_v49  ;;  %v609_v0 = vsel %vm608_vm10, %v1498_v47, %v605_v57  ;;  %vm568_vm12 = vweird.f32 %v1500_v59 }
 0x80a   :  { %v614_v3 = vsel %vm611_vm11, %v613_v62, %v609_v0  ;;  %vm569_vm14 = vmor %vm567_vm13, %vm568_vm12 }
 0x80b   :  { %v564_v4 = vsub.f32 1.0, %v563_v63  ;;  %v616_v5 = vmul.f32 2.0, %v614_v3  ;;  %v618_v27 = vmul.f32 %v614_v3, %v1809_v20 }
 0x80d   :  { %v1396_v9 = vadd.f32 -1.0, %v616_v5  ;;  %v565_v10 = vmul.f32 %v1500_v59, %v564_v4 }
 0x80f   :  { %620 = vrot.lane.b32.xlu0 %v1396_v9, %s1564_s2  ;;  %v566_v13 = vadd.f32 %v1500_v59, %v565_v10 }
 0x811   :  { %v570_v18 = vsel %vm569_vm14, %v1500_v59, %v566_v13 }
 0x812   :  { %v575_v19 = vsel %vm572_vm15, %v574_v17, %v570_v18 }
 0x813   :  { %v577_v21 = vmul.f32 2.0, %v575_v19  ;;  %v579_v1 = vmul.f32 %v575_v19, %v1804_v15 }
 0x815   :  { %v1394_v22 = vadd.f32 -1.0, %v577_v21 }
 0x817   :  { %581 = vrot.lane.b32.xlu2 %v1394_v22, %s1564_s2 }
 0x871   :  { %v582_v60 = vpop.permute.xlu2 %581 }
 0x872   :  { %v584_v25 = vmul.f32 %v582_v60, %v575_v19 }
 0x874   :  { %586 = vrot.lane.b32.xlu1 %v584_v25, %s1565_s4 }
 0x877   :  { %v153_v51 = vpop.f32.mrf.mxu0 }
 0x881   :  { %v621_v26 = vpop.permute.xlu0 %620 }
 0x882   :  { %v623_v23 = vmul.f32 %v621_v26, %v614_v3 }
 0x884   :  { %625 = vrot.lane.b32.xlu2 %v623_v23, %s1565_s4 }
 0x8de   :  { %v626_v28 = vpop.permute.xlu2 %625 }
 0x8df   :  { %v1836_v30 = vadd.f32 %v626_v28, %v618_v27 }
 0x8e1   :  { %1501 = vtanh.f32 %v1836_v30 }
 0x8e6   :  { %v587_v31 = vpop.permute.xlu1 %586 }
 0x8e7   :  { %v1502_v32 = vpop.eup %1501  ;;  %v1840_v33 = vadd.f32 %v587_v31, %v579_v1 }
 0x8e8   :  { %631 = vrot.lane.b32.xlu1 %v1502_v32, %s1564_s2 }
 0x8e9   :  { %1503 = vtanh.f32 %v1840_v33 }
 0x8ef   :  { %v1504_v34 = vpop.eup %1503 }
 0x8f0   :  { %592 = vrot.lane.b32.xlu0 %v1504_v34, %s1564_s2 }
 0x95a   :  { %v632_v35 = vpop.permute.xlu1 %631 }
 0x95b   :  { %v634_v20 = vmul.f32 %v632_v35, %v614_v3 }
 0x95d   :  { %v1845_v36 = vpack.c.bf16 %v634_v20, %v634_v20 }
 0x95f   :  { %v650_v37 = vunpack.c.l.b16 %v1845_v36 }
 0x961   :  { %v651_v38 = vpack.c.b16 %v650_v37, %v650_v37 }
 0x962   :  { %v593_v39 = vpop.permute.xlu0 %592 }
 0x963   :  { %v595_v15 = vmul.f32 %v593_v39, %v575_v19  ;;  %652 = vrot.lane.b32.xlu0 %v651_v38, %s1564_s2 }
 0x965   :  { %v596_v40 = vpack.c.bf16 %v595_v15, %v595_v15 }
 0x967   :  { %v645_v41 = vunpack.c.l.b16 %v596_v40 }
 0x969   :  { %v646_v42 = vpack.c.b16 %v645_v41, %v645_v41 }
 0x96b   :  { %647 = vrot.lane.b32.xlu2 %v646_v42, %s1565_s4 }
 0x9c5   :  { %v648_v44 = vpop.permute.xlu2 %647 }
 0x9d5   :  { %v653_v45 = vpop.permute.xlu0 %652 }
 0x9d6   :  { %v656_v46 = vsel %vm163_vm4, %v648_v44, %v653_v45 }
 0x9d7   :  { %1397 = vmatmul.msk.bf16.vlgmr.msra.gmra.mxu2 %vm194_vm5, %v656_v46  ;;  %1398 = vmatmul.msk.bf16.vlgmr.msra.gmra.mxu3 %vm194_vm5, %v656_v46 }
 0x9d8   :  { %1047 = vmatpush.bf16.msra.mxu2 %v1624_v6  ;;  %1060 = vmatpush.bf16.msra.mxu3 %v1705_v53 }
 0x9dc   :  { %1048 = vmatpush.bf16.msra.mxu2 %v1630_v8  ;;  %1061 = vmatpush.bf16.msra.mxu3 %v1711_v55 }
 0x9e0   :  { %1049 = vmatpush.bf16.msra.mxu2 %v1643_v12  ;;  %1062 = vmatpush.bf16.msra.mxu3 %v1723_v58 }
 0x9e4   :  { %1050 = vmatpush.bf16.msra.mxu2 %v1656_v16  ;;  %1063 = vmatpush.bf16.msra.mxu3 %v1735_v61 }
 0xa5a   :  { %v668_v47 = vpop.f32.mrf.mxu2  ;;  %v681_v49 = vpop.f32.mrf.mxu3 }
 0xa5b   :  { %v669_v50 = vadd.f32 %v668_v47, %v1687_v24  ;;  %v682_v6 = vadd.f32 %v681_v49, %v1761_v7 }
 0xa5d   :  { %v685_v53 = vadd.f32 %v669_v50, %v153_v51  ;;  %v1401_v52 = vmul.f32 -1.442695, %v682_v6 }
 0xa5f   :  { %v1399_v8 = vmul.f32 -1.442695, %v685_v53  ;;  %1505 = vpow2.f32 %v1401_v52 }
 0xa61   :  { %1507 = vpow2.f32 %v1399_v8  ;;  %v155_v8 = vpop.f32.mrf.mxu0 }
 0xa62   :  { %v670_v55 = vpop.f32.mrf.mxu2  ;;  %v683_v12 = vpop.f32.mrf.mxu3 }
 0xa65   :  { %v1506_v54 = vpop.eup %1505 }
 0xa66   :  { %v728_v58 = vadd.f32 1.0, %v1506_v54 }
 0xa67   :  { %v1508_v56 = vpop.eup %1507 }
 0xa68   :  { %v689_v16 = vadd.f32 1.0, %v1508_v56  ;;  %1509 = vrcp.f32 %v728_v58  ;;  %v740_v0 = vand.u32 2147483648, %v728_v58  ;;  %v738_v5 = vand.u32 2147483647, %v728_v58 }
 0xa69   :  { %vm734_vm1 = vweird.f32 %v728_v58 }
 0xa6a   :  { %1511 = vrcp.f32 %v689_v16  ;;  %v701_v48 = vand.u32 2147483648, %v689_v16  ;;  %v699_v11 = vand.u32 2147483647, %v689_v16  ;;  %v741_v13 = vor.u32 1.1754944e-38, %v740_v0 }
 0xa6b   :  { %vm739_vm6 = vcmp.eq.f32.partialorder %v738_v5, 8.507059e+37  ;;  %vm695_vm7 = vweird.f32 %v689_v16 }
 0xa6c   :  { %v702_v21 = vor.u32 1.1754944e-38, %v701_v48  ;;  %vm700_vm9 = vcmp.eq.f32.partialorder %v699_v11, 8.507059e+37 }
 0xa6e   :  { %v1510_v61 = vpop.eup %1509 }
 0xa6f   :  { %v730_v57 = vmul.f32 %v1510_v61, %v728_v58  ;;  %vm735_vm0 = vweird.f32 %v1510_v61 }
 0xa70   :  { %v1512_v59 = vpop.eup %1511  ;;  %vm736_vm3 = vmor %vm734_vm1, %vm735_vm0 }
 0xa71   :  { %v691_v62 = vmul.f32 %v1512_v59, %v689_v16  ;;  %v731_v63 = vsub.f32 1.0, %v730_v57  ;;  %vm696_vm2 = vweird.f32 %v1512_v59 }
 0xa72   :  { %vm697_vm8 = vmor %vm695_vm7, %vm696_vm2 }
 0xa73   :  { %v692_v3 = vsub.f32 1.0, %v691_v62  ;;  %v732_v4 = vmul.f32 %v1510_v61, %v731_v63 }
 0xa75   :  { %v733_v9 = vadd.f32 %v1510_v61, %v732_v4  ;;  %v693_v10 = vmul.f32 %v1512_v59, %v692_v3 }
 0xa77   :  { %v737_v17 = vsel %vm736_vm3, %v1510_v61, %v733_v9  ;;  %v694_v18 = vadd.f32 %v1512_v59, %v693_v10 }
 0xa78   :  { %v742_v19 = vsel %vm739_vm6, %v741_v13, %v737_v17 }
 0xa79   :  { %v744_v22 = vmul.f32 2.0, %v742_v19  ;;  %v698_v60 = vsel %vm697_vm8, %v1512_v59, %v694_v18  ;;  %v746_v34 = vmul.f32 %v742_v19, %v1836_v30 }
 0xa7a   :  { %v703_v25 = vsel %vm700_vm9, %v702_v21, %v698_v60 }
 0xa7b   :  { %v1402_v26 = vadd.f32 -1.0, %v744_v22  ;;  %v705_v23 = vmul.f32 2.0, %v703_v25  ;;  %v707_v38 = vmul.f32 %v703_v25, %v1840_v33 }
 0xa7d   :  { %748 = vrot.lane.b32.xlu2 %v1402_v26, %s1564_s2  ;;  %v1400_v27 = vadd.f32 -1.0, %v705_v23 }
 0xa7f   :  { %709 = vrot.lane.b32.xlu1 %v1400_v27, %s1564_s2 }
 0xad7   :  { %v749_v28 = vpop.permute.xlu2 %748 }
 0xad8   :  { %v751_v1 = vmul.f32 %v749_v28, %v742_v19 }
 0xada   :  { %753 = vrot.lane.b32.xlu1 %v751_v1, %s1565_s4 }
 0xaf1   :  { %v710_v31 = vpop.permute.xlu1 %709 }
 0xaf2   :  { %v712_v32 = vmul.f32 %v710_v31, %v703_v25 }
 0xaf4   :  { %714 = vrot.lane.b32.xlu0 %v712_v32, %s1565_s4 }
 0xb4c   :  { %v754_v35 = vpop.permute.xlu1 %753 }
 0xb4d   :  { %v1871_v20 = vadd.f32 %v754_v35, %v746_v34 }
 0xb4f   :  { %1513 = vtanh.f32 %v1871_v20 }
 0xb55   :  { %v1514_v37 = vpop.eup %1513 }
 0xb56   :  { %759 = vrot.lane.b32.xlu0 %v1514_v37, %s1564_s2 }
 0xb66   :  { %v715_v39 = vpop.permute.xlu0 %714 }
 0xb67   :  { %v1876_v15 = vadd.f32 %v715_v39, %v707_v38 }
 0xb69   :  { %1515 = vtanh.f32 %v1876_v15 }
 0xb6f   :  { %v1516_v40 = vpop.eup %1515 }
 0xb70   :  { %720 = vrot.lane.b32.xlu2 %v1516_v40, %s1564_s2 }
 0xbc8   :  { %v760_v41 = vpop.permute.xlu0 %759 }
 0xbc9   :  { %v762_v30 = vmul.f32 %v760_v41, %v742_v19 }
 0xbca   :  { %v721_v42 = vpop.permute.xlu2 %720 }
 0xbcb   :  { %v1880_v43 = vpack.c.bf16 %v762_v30, %v762_v30  ;;  %v723_v44 = vmul.f32 %v721_v42, %v703_v25 }
 0xbcd   :  { %v778_v45 = vunpack.c.l.b16 %v1880_v43  ;;  %v724_v46 = vpack.c.bf16 %v723_v44, %v723_v44 }
 0xbcf   :  { %v779_v47 = vpack.c.b16 %v778_v45, %v778_v45  ;;  %v773_v49 = vunpack.c.l.b16 %v724_v46 }
 0xbd1   :  { %v774_v33 = vpack.c.b16 %v773_v49, %v773_v49  ;;  %780 = vrot.lane.b32.xlu2 %v779_v47, %s1564_s2 }
 0xbd3   :  { %775 = vrot.lane.b32.xlu1 %v774_v33, %s1565_s4 }
 0xc2b   :  { %v781_v50 = vpop.permute.xlu2 %780 }
 0xc45   :  { %v776_v6 = vpop.permute.xlu1 %775 }
 0xc46   :  { %v784_v51 = vsel %vm163_vm4, %v776_v6, %v781_v50 }
 0xc47   :  { %1403 = vmatmul.msk.bf16.vlgmr.msrb.gmra.mxu1 %vm194_vm5, %v784_v51  ;;  %1404 = vmatmul.msk.bf16.vlgmr.msrb.gmra.mxu2 %vm194_vm5, %v784_v51 }
 0xcc4   :  { %v796_v53 = vpop.f32.mrf.mxu1 }
 0xcc5   :  { %v797_v52 = vadd.f32 %v796_v53, %v1687_v24 }
 0xcc7   :  { %v813_v55 = vadd.f32 %v797_v52, %v155_v8 }
 0xcc9   :  { %v1405_v12 = vmul.f32 -1.442695, %v813_v55  ;;  %v1445_v55 = vld [vmem:[%s2004_s0 + $0x18] sm:$0xff] }
 0xcca   :  { %v809_v54 = vpop.f32.mrf.mxu2  ;;  %157 = vmatmul.bf16.gmra.mxu0 %v1445_v55 }
 0xccb   :  { %1517 = vpow2.f32 %v1405_v12  ;;  %v810_v58 = vadd.f32 %v809_v54, %v1761_v7 }
 0xccc   :  { %v798_v56 = vpop.f32.mrf.mxu1 }
 0xccd   :  { %v1407_v16 = vmul.f32 -1.442695, %v810_v58 }
 0xccf   :  { %1519 = vpow2.f32 %v1407_v16 }
 0xcd1   :  { %v1518_v61 = vpop.eup %1517 }
 0xcd2   :  { %v817_v57 = vadd.f32 1.0, %v1518_v61  ;;  %v811_v59 = vpop.f32.mrf.mxu2 }
 0xcd4   :  { %1521 = vrcp.f32 %v817_v57  ;;  %v827_v48 = vand.u32 2147483647, %v817_v57  ;;  %v829_v9 = vand.u32 2147483648, %v817_v57  ;;  %vm823_vm11 = vweird.f32 %v817_v57 }
 0xcd5   :  { %v1520_v62 = vpop.eup %1519 }
 0xcd6   :  { %v856_v63 = vadd.f32 1.0, %v1520_v62  ;;  %vm828_vm13 = vcmp.eq.f32.partialorder %v827_v48, 8.507059e+37  ;;  %v830_v18 = vor.u32 1.1754944e-38, %v829_v9 }
 0xcd8   :  { %1523 = vrcp.f32 %v856_v63  ;;  %v868_v19 = vand.u32 2147483648, %v856_v63  ;;  %v866_v60 = vand.u32 2147483647, %v856_v63  ;;  %vm862_vm15 = vweird.f32 %v856_v63 }
 0xcda   :  { %v1522_v0 = vpop.eup %1521  ;;  %v869_v27 = vor.u32 1.1754944e-38, %v868_v19  ;;  %vm867_vm1 = vcmp.eq.f32.partialorder %v866_v60, 8.507059e+37 }
 0xcdb   :  { %v819_v3 = vmul.f32 %v1522_v0, %v817_v57  ;;  %vm824_vm10 = vweird.f32 %v1522_v0 }
 0xcdc   :  { %vm825_vm12 = vmor %vm823_vm11, %vm824_vm10 }
 0xcdd   :  { %v820_v4 = vsub.f32 1.0, %v819_v3 }
 0xcde   :  { %v1524_v5 = vpop.eup %1523 }
 0xcdf   :  { %v858_v10 = vmul.f32 %v1524_v5, %v856_v63  ;;  %v821_v11 = vmul.f32 %v1522_v0, %v820_v4  ;;  %vm863_vm14 = vweird.f32 %v1524_v5 }
 0xce0   :  { %vm864_vm0 = vmor %vm862_vm15, %vm863_vm14 }
 0xce1   :  { %v859_v13 = vsub.f32 1.0, %v858_v10  ;;  %v822_v17 = vadd.f32 %v1522_v0, %v821_v11 }
 0xce3   :  { %v826_v21 = vsel %vm825_vm12, %v1522_v0, %v822_v17  ;;  %v860_v22 = vmul.f32 %v1524_v5, %v859_v13 }
 0xce4   :  { %v831_v25 = vsel %vm828_vm13, %v830_v18, %v826_v21 }
 0xce5   :  { %v833_v26 = vmul.f32 2.0, %v831_v25  ;;  %v861_v23 = vadd.f32 %v1524_v5, %v860_v22  ;;  %v835_v40 = vmul.f32 %v831_v25, %v1876_v15 }
 0xce7   :  { %v1406_v28 = vadd.f32 -1.0, %v833_v26  ;;  %v865_v1 = vsel %vm864_vm0, %v1524_v5, %v861_v23 }
 0xce8   :  { %v870_v31 = vsel %vm867_vm1, %v869_v27, %v865_v1 }
 0xce9   :  { %837 = vrot.lane.b32.xlu0 %v1406_v28, %s1564_s2  ;;  %v872_v32 = vmul.f32 2.0, %v870_v31  ;;  %v874_v44 = vmul.f32 %v870_v31, %v1871_v20 }
 0xceb   :  { %v1408_v34 = vadd.f32 -1.0, %v872_v32 }
 0xced   :  { %876 = vrot.lane.b32.xlu1 %v1408_v34, %s1564_s2 }
 0xd47   :  { %v158_v59 = vpop.f32.mrf.mxu0 }
 0xd5b   :  { %v838_v35 = vpop.permute.xlu0 %837 }
 0xd5c   :  { %v840_v37 = vmul.f32 %v838_v35, %v831_v25 }
 0xd5e   :  { %842 = vrot.lane.b32.xlu2 %v840_v37, %s1565_s4 }
 0xd5f   :  { %v877_v38 = vpop.permute.xlu1 %876 }
 0xd60   :  { %v879_v39 = vmul.f32 %v877_v38, %v870_v31 }
 0xd62   :  { %881 = vrot.lane.b32.xlu0 %v879_v39, %s1565_s4 }
 0xdb8   :  { %v843_v41 = vpop.permute.xlu2 %842 }
 0xdb9   :  { %v1895_v30 = vadd.f32 %v843_v41, %v835_v40 }
 0xdbb   :  { %1525 = vtanh.f32 %v1895_v30 }
 0xdc1   :  { %v1526_v42 = vpop.eup %1525 }
 0xdc2   :  { %848 = vrot.lane.b32.xlu1 %v1526_v42, %s1564_s2 }
 0xdd4   :  { %v882_v45 = vpop.permute.xlu0 %881 }
 0xdd5   :  { %v1900_v46 = vadd.f32 %v882_v45, %v874_v44 }
 0xdd7   :  { %1527 = vtanh.f32 %v1900_v46 }
 0xddd   :  { %v1528_v47 = vpop.eup %1527 }
 0xdde   :  { %887 = vrot.lane.b32.xlu2 %v1528_v47, %s1564_s2 }
 0xe34   :  { %v849_v49 = vpop.permute.xlu1 %848 }
 0xe35   :  { %v851_v15 = vmul.f32 %v849_v49, %v831_v25 }
 0xe37   :  { %v852_v33 = vpack.c.bf16 %v851_v15, %v851_v15 }
 0xe38   :  { %v888_v50 = vpop.permute.xlu2 %887 }
 0xe39   :  { %v901_v6 = vunpack.c.l.b16 %v852_v33  ;;  %v890_v51 = vmul.f32 %v888_v50, %v870_v31 }
 0xe3b   :  { %v902_v53 = vpack.c.b16 %v901_v6, %v901_v6  ;;  %v1904_v52 = vpack.c.bf16 %v890_v51, %v890_v51 }
 0xe3d   :  { %v906_v8 = vunpack.c.l.b16 %v1904_v52  ;;  %903 = vrot.lane.b32.xlu0 %v902_v53, %s1565_s4 }
 0xe3f   :  { %v907_v20 = vpack.c.b16 %v906_v8, %v906_v8 }
 0xe41   :  { %908 = vrot.lane.b32.xlu1 %v907_v20, %s1564_s2 }
 0xeaf   :  { %v904_v12 = vpop.permute.xlu0 %903 }
 0xeb3   :  { %v909_v54 = vpop.permute.xlu1 %908 }
 0xeb4   :  { %v912_v58 = vsel %vm163_vm4, %v904_v12, %v909_v54 }
 0xeb5   :  { %1409 = vmatmul.msk.bf16.vlgmr.msrb.gmra.mxu3 %vm194_vm5, %v912_v58  ;;  %1410 = vmatmul.msk.bf16.vlgmr.msra.gmra.mxu1 %vm194_vm5, %v912_v58 }
 0xf32   :  { %v937_v56 = vpop.f32.mrf.mxu1 }
 0xf33   :  { %v938_v16 = vadd.f32 %v937_v56, %v1761_v7 }
 0xf35   :  { %v1413_v61 = vmul.f32 -1.442695, %v938_v16 }
 0xf37   :  { %1529 = vpow2.f32 %v1413_v61 }
 0xf38   :  { %v924_v57 = vpop.f32.mrf.mxu3 }
 0xf39   :  { %v925_v62 = vadd.f32 %v924_v57, %v1687_v24 }
 0xf3a   :  { %v939_v63 = vpop.f32.mrf.mxu1 }
 0xf3b   :  { %v941_v0 = vadd.f32 %v925_v62, %v158_v59 }
 0xf3d   :  { %v1530_v3 = vpop.eup %1529  ;;  %v1411_v4 = vmul.f32 -1.442695, %v941_v0 }
 0xf3e   :  { %v984_v5 = vadd.f32 1.0, %v1530_v3 }
 0xf3f   :  { %1531 = vpow2.f32 %v1411_v4 }
 0xf40   :  { %1533 = vrcp.f32 %v984_v5  ;;  %v926_v48 = vpop.f32.mrf.mxu3  ;;  %v996_v18 = vand.u32 2147483648, %v984_v5  ;;  %v994_v21 = vand.u32 2147483647, %v984_v5  ;;  %vm990_vm3 = vweird.f32 %v984_v5 }
 0xf41   :  { %v160_v48 = vpop.f32.mrf.mxu0 }
 0xf42   :  { %v997_v25 = vor.u32 1.1754944e-38, %v996_v18  ;;  %vm995_vm7 = vcmp.eq.f32.partialorder %v994_v21, 8.507059e+37 }
 0xf45   :  { %v1532_v9 = vpop.eup %1531 }
 0xf46   :  { %v1534_v10 = vpop.eup %1533  ;;  %v945_v11 = vadd.f32 1.0, %v1532_v9 }
 0xf47   :  { %v986_v13 = vmul.f32 %v1534_v10, %v984_v5  ;;  %vm991_vm2 = vweird.f32 %v1534_v10 }
 0xf48   :  { %1535 = vrcp.f32 %v945_v11  ;;  %vm992_vm6 = vmor %vm990_vm3, %vm991_vm2  ;;  %v957_v31 = vand.u32 2147483648, %v945_v11  ;;  %v955_v35 = vand.u32 2147483647, %v945_v11  ;;  %vm951_vm9 = vweird.f32 %v945_v11 }
 0xf49   :  { %v987_v17 = vsub.f32 1.0, %v986_v13 }
 0xf4a   :  { %v958_v38 = vor.u32 1.1754944e-38, %v957_v31  ;;  %vm956_vm11 = vcmp.eq.f32.partialorder %v955_v35, 8.507059e+37 }
 0xf4b   :  { %v988_v19 = vmul.f32 %v1534_v10, %v987_v17 }
 0xf4d   :  { %v989_v22 = vadd.f32 %v1534_v10, %v988_v19 }
 0xf4e   :  { %v1536_v60 = vpop.eup %1535 }
 0xf4f   :  { %v947_v26 = vmul.f32 %v1536_v60, %v945_v11  ;;  %v993_v23 = vsel %vm992_vm6, %v1534_v10, %v989_v22  ;;  %vm952_vm8 = vweird.f32 %v1536_v60 }
 0xf50   :  { %v998_v27 = vsel %vm995_vm7, %v997_v25, %v993_v23  ;;  %vm953_vm10 = vmor %vm951_vm9, %vm952_vm8 }
 0xf51   :  { %v948_v28 = vsub.f32 1.0, %v947_v26  ;;  %v1000_v1 = vmul.f32 2.0, %v998_v27  ;;  %v1002_v15 = vmul.f32 %v998_v27, %v1900_v46 }
 0xf53   :  { %v1414_v32 = vadd.f32 -1.0, %v1000_v1  ;;  %v949_v34 = vmul.f32 %v1536_v60, %v948_v28 }
 0xf55   :  { %1004 = vrot.lane.b32.xlu0 %v1414_v32, %s1564_s2  ;;  %v950_v37 = vadd.f32 %v1536_v60, %v949_v34 }
 0xf57   :  { %v954_v39 = vsel %vm953_vm10, %v1536_v60, %v950_v37 }
 0xf58   :  { %v959_v40 = vsel %vm956_vm11, %v958_v38, %v954_v39 }
 0xf59   :  { %v961_v41 = vmul.f32 2.0, %v959_v40  ;;  %v963_v6 = vmul.f32 %v959_v40, %v1895_v30 }
 0xf5b   :  { %v1412_v42 = vadd.f32 -1.0, %v961_v41 }
 0xf5d   :  { %965 = vrot.lane.b32.xlu2 %v1412_v42, %s1564_s2 }
 0xfb7   :  { %v966_v44 = vpop.permute.xlu2 %965 }
 0xfb8   :  { %v968_v45 = vmul.f32 %v966_v44, %v959_v40 }
 0xfba   :  { %970 = vrot.lane.b32.xlu1 %v968_v45, %s1565_s4 }
 0xfc7   :  { %v1005_v47 = vpop.permute.xlu0 %1004 }
 0xfc8   :  { %v1007_v49 = vmul.f32 %v1005_v47, %v998_v27 }
 0xfca   :  { %1009 = vrot.lane.b32.xlu2 %v1007_v49, %s1565_s4 }
0x1024   :  { %v1010_v33 = vpop.permute.xlu2 %1009 }
0x1025   :  { %v1922_v50 = vadd.f32 %v1010_v33, %v1002_v15 }
0x1027   :  { %1537 = vtanh.f32 %v1922_v50 }
0x102c   :  { %v971_v51 = vpop.permute.xlu1 %970 }
0x102d   :  { %v1538_v53 = vpop.eup %1537  ;;  %v1926_v8 = vadd.f32 %v971_v51, %v963_v6 }
0x102e   :  { %1015 = vrot.lane.b32.xlu1 %v1538_v53, %s1564_s2 }
0x102f   :  { %1539 = vtanh.f32 %v1926_v8 }
0x1035   :  { %v1540_v20 = vpop.eup %1539 }
0x1036   :  { %976 = vrot.lane.b32.xlu0 %v1540_v20, %s1564_s2 }
0x10a0   :  { %v1016_v55 = vpop.permute.xlu1 %1015 }
0x10a1   :  { %v1018_v46 = vmul.f32 %v1016_v55, %v998_v27 }
0x10a3   :  { %v1931_v12 = vpack.c.bf16 %v1018_v46, %v1018_v46 }
0x10a5   :  { %v1034_v54 = vunpack.c.l.b16 %v1931_v12 }
0x10a7   :  { %v1035_v58 = vpack.c.b16 %v1034_v54, %v1034_v54 }
0x10a8   :  { %v977_v56 = vpop.permute.xlu0 %976 }
0x10a9   :  { %v979_v30 = vmul.f32 %v977_v56, %v959_v40  ;;  %1036 = vrot.lane.b32.xlu0 %v1035_v58, %s1564_s2 }
0x10ab   :  { %v980_v16 = vpack.c.bf16 %v979_v30, %v979_v30 }
0x10ad   :  { %v1029_v61 = vunpack.c.l.b16 %v980_v16 }
0x10af   :  { %v1030_v57 = vpack.c.b16 %v1029_v61, %v1029_v61 }
0x10b1   :  { %1031 = vrot.lane.b32.xlu2 %v1030_v57, %s1565_s4 }
0x110b   :  { %v1032_v59 = vpop.permute.xlu2 %1031 }
0x111b   :  { %v1037_v62 = vpop.permute.xlu0 %1036 }
0x111c   :  { %v1040_v63 = vsel %vm163_vm4, %v1032_v59, %v1037_v62 }
0x111d   :  { %1415 = vmatmul.msk.bf16.vlgmr.msra.gmra.mxu2 %vm194_vm5, %v1040_v63  ;;  %1416 = vmatmul.msk.bf16.vlgmr.msra.gmra.mxu3 %vm194_vm5, %v1040_v63 }
0x11a0   :  { %v1052_v0 = vpop.f32.mrf.mxu2  ;;  %v1065_v3 = vpop.f32.mrf.mxu3 }
0x11a1   :  { %v1053_v4 = vadd.f32 %v1052_v0, %v1687_v24  ;;  %v1066_v5 = vadd.f32 %v1065_v3, %v1761_v7  ;;  %v27_v0 = vld [vmem:[%s2006_s1] sm:$0xff] }
0x11a3   :  { %v1069_v9 = vadd.f32 %v1053_v4, %v160_v48  ;;  %v1419_v10 = vmul.f32 -1.442695, %v1066_v5  ;;  %v1296_v48 = vadd.s32 4294967295, %v27_v0 }
0x11a5   :  { %v1417_v11 = vmul.f32 -1.442695, %v1069_v9  ;;  %1541 = vpow2.f32 %v1419_v10  ;;  %vm380_vm6 = vcmp.eq.s32.totalorder %v1296_v48, 0  ;;  %vm508_vm10 = vcmp.eq.s32.totalorder %v1296_v48, 1 }
0x11a6   :  { %v381_v10 = vsel %vm380_vm6, 1, %v1563_v2  ;;  %vm764_vm11 = vcmp.eq.s32.totalorder %v1296_v48, 3 }
0x11a7   :  { %1543 = vpow2.f32 %v1417_v11 }
0x11a8   :  { %v1054_v13 = vpop.f32.mrf.mxu2  ;;  %v1067_v17 = vpop.f32.mrf.mxu3 }
0x11ab   :  { %v1542_v18 = vpop.eup %1541 }
0x11ac   :  { %v1112_v19 = vadd.f32 1.0, %v1542_v18 }
0x11ad   :  { %v1544_v21 = vpop.eup %1543 }
0x11ae   :  { %v1073_v22 = vadd.f32 1.0, %v1544_v21  ;;  %1545 = vrcp.f32 %v1112_v19  ;;  %v1124_v27 = vand.u32 2147483648, %v1112_v19  ;;  %v1122_v31 = vand.u32 2147483647, %v1112_v19 }
0x11af   :  { %vm1118_vm13 = vweird.f32 %v1112_v19 }
0x11b0   :  { %1547 = vrcp.f32 %v1073_v22  ;;  %v1085_v32 = vand.u32 2147483648, %v1073_v22  ;;  %v1083_v37 = vand.u32 2147483647, %v1073_v22  ;;  %v1125_v38 = vor.u32 1.1754944e-38, %v1124_v27 }
0x11b1   :  { %vm1123_vm0 = vcmp.eq.f32.partialorder %v1122_v31, 8.507059e+37  ;;  %vm1079_vm1 = vweird.f32 %v1073_v22 }
0x11b2   :  { %v1086_v42 = vor.u32 1.1754944e-38, %v1085_v32  ;;  %vm1084_vm3 = vcmp.eq.f32.partialorder %v1083_v37, 8.507059e+37 }
0x11b4   :  { %v1546_v60 = vpop.eup %1545 }
0x11b5   :  { %v1114_v25 = vmul.f32 %v1546_v60, %v1112_v19  ;;  %vm1119_vm12 = vweird.f32 %v1546_v60 }
0x11b6   :  { %v1548_v26 = vpop.eup %1547  ;;  %vm1120_vm15 = vmor %vm1118_vm13, %vm1119_vm12  ;;  %vm1020_vm12 = vcmp.eq.s32.totalorder %v1296_v48, 5  ;;  %vm636_vm13 = vcmp.eq.s32.totalorder %v1296_v48, 2 }
0x11b7   :  { %v1075_v24 = vmul.f32 %v1548_v26, %v1073_v22  ;;  %v1115_v23 = vsub.f32 1.0, %v1114_v25  ;;  %vm1080_vm14 = vweird.f32 %v1548_v26 }
0x11b8   :  { %vm1081_vm2 = vmor %vm1079_vm1, %vm1080_vm14  ;;  %vm892_vm14 = vcmp.eq.s32.totalorder %v1296_v48, 4 }
0x11b9   :  { %v1076_v28 = vsub.f32 1.0, %v1075_v24  ;;  %v1116_v1 = vmul.f32 %v1546_v60, %v1115_v23 }
0x11bb   :  { %v1117_v34 = vadd.f32 %v1546_v60, %v1116_v1  ;;  %v1077_v35 = vmul.f32 %v1548_v26, %v1076_v28 }
0x11bd   :  { %v1121_v39 = vsel %vm1120_vm15, %v1546_v60, %v1117_v34  ;;  %v1078_v40 = vadd.f32 %v1548_v26, %v1077_v35  ;;  %vm1148_vm15 = vcmp.eq.s32.totalorder %v1296_v48, 6 }
0x11be   :  { %v1126_v41 = vsel %vm1123_vm0, %v1125_v38, %v1121_v39  ;;  %v509_v38 = vsel %vm508_vm10, 1, %v1563_v2  ;;  %v765_v39 = vsel %vm764_vm11, 1, %v1563_v2  ;;  %vm1223_vm0 = vcmp.eq.s32.totalorder %v1296_v48, 7 }
0x11bf   :  { %v1128_v44 = vmul.f32 2.0, %v1126_v41  ;;  %v1082_v45 = vsel %vm1081_vm2, %v1548_v26, %v1078_v40  ;;  %v1130_v55 = vmul.f32 %v1126_v41, %v1922_v50 }
0x11c0   :  { %v1087_v47 = vsel %vm1084_vm3, %v1086_v42, %v1082_v45  ;;  %v1021_v42 = vsel %vm1020_vm12, 1, %v1563_v2  ;;  %v893_v45 = vsel %vm892_vm14, 1, %v1563_v2 }
0x11c1   :  { %v1420_v49 = vadd.f32 -1.0, %v1128_v44  ;;  %v1089_v15 = vmul.f32 2.0, %v1087_v47  ;;  %v1091_v56 = vmul.f32 %v1087_v47, %v1926_v8  ;;  %v637_v44 = vsel %vm636_vm13, 1, %v1563_v2 }
0x11c3   :  { %1132 = vrot.lane.b32.xlu2 %v1420_v49, %s1564_s2  ;;  %v1418_v33 = vadd.f32 -1.0, %v1089_v15  ;;  %v1224_v49 = vsel %vm1223_vm0, 1, %v1563_v2 }
0x11c5   :  { %1093 = vrot.lane.b32.xlu1 %v1418_v33, %s1564_s2 }
0x121d   :  { %v1133_v6 = vpop.permute.xlu2 %1132 }
0x121e   :  { %v1135_v51 = vmul.f32 %v1133_v6, %v1126_v41 }
0x1220   :  { %1137 = vrot.lane.b32.xlu1 %v1135_v51, %s1565_s4 }
0x1237   :  { %v1094_v53 = vpop.permute.xlu1 %1093 }
0x1238   :  { %v1096_v20 = vmul.f32 %v1094_v53, %v1087_v47 }
0x123a   :  { %1098 = vrot.lane.b32.xlu0 %v1096_v20, %s1565_s4 }
0x1292   :  { %v1138_v46 = vpop.permute.xlu1 %1137 }
0x1293   :  { %v1946_v54 = vadd.f32 %v1138_v46, %v1130_v55  ;;  %v1455_v55 = vld [vmem:[%s2007_s5 + $0x8] sm:$0xff] }
0x1294   :  { %1265 = vmatpush.bf16.msrb.mxu1 %v1455_v55 }
0x1295   :  { %1549 = vtanh.f32 %v1946_v54 }
0x129b   :  { %v1550_v58 = vpop.eup %1549 }
0x129c   :  { %1143 = vrot.lane.b32.xlu0 %v1550_v58, %s1564_s2 }
0x12ac   :  { %v1099_v30 = vpop.permute.xlu0 %1098 }
0x12ad   :  { %v1101_v16 = vadd.f32 %v1099_v30, %v1091_v56 }
0x12af   :  { %1551 = vtanh.f32 %v1101_v16 }
0x12b5   :  { %v1552_v61 = vpop.eup %1551 }
0x12b6   :  { %1104 = vrot.lane.b32.xlu2 %v1552_v61, %s1564_s2 }
0x130e   :  { %v1144_v57 = vpop.permute.xlu0 %1143 }
0x130f   :  { %v1146_v59 = vmul.f32 %v1144_v57, %v1126_v41 }
0x1310   :  { %v1105_v62 = vpop.permute.xlu2 %1104 }
0x1311   :  { %v1952_v50 = vpack.c.bf16 %v1146_v59, %v1146_v59  ;;  %v1107_v63 = vmul.f32 %v1105_v62, %v1087_v47  ;;  %v1149_v47 = vsel %vm1148_vm15, 1, %v1563_v2  ;;  %v1454_v2 = vld [vmem:[%s2007_s5] sm:$0xff] }
0x1312   :  { %1266 = vmatpush.bf16.msrb.mxu1 %v1454_v2 }
0x1313   :  { %v1162_v3 = vunpack.c.l.b16 %v1952_v50  ;;  %v1108_v4 = vpack.c.bf16 %v1107_v63, %v1107_v63 }
0x1315   :  { %v1163_v8 = vpack.c.b16 %v1162_v3, %v1162_v3  ;;  %v1157_v5 = vunpack.c.l.b16 %v1108_v4 }
0x1317   :  { %v1158_v9 = vpack.c.b16 %v1157_v5, %v1157_v5  ;;  %1164 = vrot.lane.b32.xlu2 %v1163_v8, %s1564_s2 }
0x1319   :  { %1159 = vrot.lane.b32.xlu1 %v1158_v9, %s1565_s4 }
0x131f   :  { %383 = vperm.xlu2 %1459, %v381_v10  }
0x1327   :  { %767 = vperm.xlu2 %1459, %v765_v39  }
0x132f   :  { %1023 = vperm.xlu2 %1459, %v1021_v42  }
0x1337   :  { %1226 = vperm.xlu2 %1459, %v1224_v49  }
0x1371   :  { %v1165_v11 = vpop.permute.xlu2 %1164 }
0x1379   :  { %v384_v53 = vpop.permute.xlu2 %383 }
0x137a   :  { %vm385_vm1 = vcmp.eq.s32.totalorder %v384_v53, 1 }
0x137b   :  { %vm386_vm6 = vmpackc.low %vm385_vm1, %vm385_vm1 }
0x137c   :  { %v387_v30 = vsel %vm386_vm6, %v1779_v14, 0 }
0x1381   :  { %v768_v46 = vpop.permute.xlu2 %767 }
0x1389   :  { %v1024_v56 = vpop.permute.xlu2 %1023 }
0x138a   :  { %vm1025_vm12 = vcmp.eq.s32.totalorder %v1024_v56, 1 }
0x138b   :  { %v1160_v13 = vpop.permute.xlu1 %1159  ;;  %vm1026_vm14 = vmpackc.low %vm1025_vm12, %vm1025_vm12 }
0x138c   :  { %v1168_v17 = vsel %vm163_vm4, %v1160_v13, %v1165_v11 }
0x138d   :  { %1421 = vmatmul.msk.bf16.vlgmr.msrb.gmra.mxu0 %vm194_vm5, %v1168_v17 }
0x1391   :  { %v1227_v59 = vpop.permute.xlu2 %1226 }
0x1392   :  { %vm1228_vm0 = vcmp.eq.s32.totalorder %v1227_v59, 1 }
0x1393   :  { %vm1229_vm1 = vmpackc.low %vm1228_vm0, %vm1228_vm0 }
0x140a   :  { %v1180_v18 = vpop.f32.mrf.mxu0 }
0x140b   :  { %v1181_v19 = vadd.f32 %v1180_v18, %v1761_v7 }
0x140d   :  { %v1422_v21 = vmul.f32 -1.442695, %v1181_v19 }
0x140f   :  { %1553 = vpow2.f32 %v1422_v21 }
0x1412   :  { %v1182_v22 = vpop.f32.mrf.mxu0 }
0x1415   :  { %v1554_v60 = vpop.eup %1553 }
0x1416   :  { %v1187_v25 = vadd.f32 1.0, %v1554_v60 }
0x1418   :  { %1555 = vrcp.f32 %v1187_v25  ;;  %v1199_v27 = vand.u32 2147483648, %v1187_v25  ;;  %v1197_v1 = vand.u32 2147483647, %v1187_v25  ;;  %vm1193_vm8 = vweird.f32 %v1187_v25 }
0x141a   :  { %v1200_v32 = vor.u32 1.1754944e-38, %v1199_v27  ;;  %vm1198_vm5 = vcmp.eq.f32.partialorder %v1197_v1, 8.507059e+37 }
0x141e   :  { %v1556_v26 = vpop.eup %1555 }
0x141f   :  { %v1189_v24 = vmul.f32 %v1556_v26, %v1187_v25  ;;  %vm1194_vm7 = vweird.f32 %v1556_v26 }
0x1420   :  { %vm1195_vm9 = vmor %vm1193_vm8, %vm1194_vm7 }
0x1421   :  { %v1190_v23 = vsub.f32 1.0, %v1189_v24 }
0x1423   :  { %v1191_v28 = vmul.f32 %v1556_v26, %v1190_v23 }
0x1425   :  { %v1192_v31 = vadd.f32 %v1556_v26, %v1191_v28 }
0x1427   :  { %v1196_v34 = vsel %vm1195_vm9, %v1556_v26, %v1192_v31  ;;  %vm769_vm9 = vcmp.eq.s32.totalorder %v768_v46, 1 }
0x1428   :  { %v1964_v7 = vsel %vm1198_vm5, %v1200_v32, %v1196_v34  ;;  %vm770_vm10 = vmpackc.low %vm769_vm9, %vm769_vm9 }
0x1429   :  { %v1203_v35 = vmul.f32 2.0, %v1964_v7  ;;  %v1205_v15 = vmul.f32 %v1964_v7, %v1946_v54 }
0x142b   :  { %v1423_v37 = vadd.f32 -1.0, %v1203_v35 }
0x142d   :  { %1207 = vrot.lane.b32.xlu0 %v1423_v37, %s1564_s2 }
0x1435   :  { %511 = vperm.xlu0 %1460, %v509_v38  }
0x149f   :  { %v1208_v40 = vpop.permute.xlu0 %1207 }
0x14a0   :  { %v1210_v41 = vmul.f32 %v1208_v40, %v1964_v7 }
0x14a2   :  { %1212 = vrot.lane.b32.xlu1 %v1210_v41, %s1565_s4 }
0x14a7   :  { %v512_v58 = vpop.permute.xlu0 %511 }
0x14a8   :  { %vm513_vm2 = vcmp.eq.s32.totalorder %v512_v58, 1 }
0x14a9   :  { %vm514_vm7 = vmpackc.low %vm513_vm2, %vm513_vm2 }
0x14aa   :  { %639 = vperm.xlu1 %1461, %v637_v44   ;;  %v515_v16 = vsel %vm514_vm7, %v1813_v29, %v387_v30 }
0x14b2   :  { %895 = vperm.xlu1 %1461, %v893_v45  }
0x14ba   :  { %1151 = vperm.xlu1 %1461, %v1149_v47  }
0x1514   :  { %v1213_v33 = vpop.permute.xlu1 %1212 }
0x1515   :  { %v1215_v6 = vadd.f32 %v1213_v33, %v1205_v15 }
0x1517   :  { %1557 = vtanh.f32 %v1215_v6 }
0x151c   :  { %v640_v20 = vpop.permute.xlu1 %639 }
0x151d   :  { %v1558_v51 = vpop.eup %1557  ;;  %vm641_vm3 = vcmp.eq.s32.totalorder %v640_v20, 1 }
0x151e   :  { %1218 = vrot.lane.b32.xlu0 %v1558_v51, %s1564_s2  ;;  %vm642_vm8 = vmpackc.low %vm641_vm3, %vm641_vm3 }
0x151f   :  { %v643_v57 = vsel %vm642_vm8, %v1845_v36, %v515_v16 }
0x1520   :  { %v771_v62 = vsel %vm770_vm10, %v1880_v43, %v643_v57 }
0x1524   :  { %v896_v54 = vpop.permute.xlu1 %895 }
0x1525   :  { %vm897_vm5 = vcmp.eq.s32.totalorder %v896_v54, 1 }
0x1526   :  { %vm898_vm11 = vmpackc.low %vm897_vm5, %vm897_vm5 }
0x1527   :  { %v899_v63 = vsel %vm898_vm11, %v1904_v52, %v771_v62  ;;  %v1462_v52 = vld [vmem:[%s2008_s6] ss:$0 sm:$0xff] }
0x1528   :  { %v1027_v29 = vsel %vm1026_vm14, %v1931_v12, %v899_v63 }
0x152c   :  { %v1152_v61 = vpop.permute.xlu1 %1151 }
0x152d   :  { %vm1153_vm13 = vcmp.eq.s32.totalorder %v1152_v61, 1 }
0x152e   :  { %vm1154_vm15 = vmpackc.low %vm1153_vm13, %vm1153_vm13 }
0x152f   :  { %v1155_v36 = vsel %vm1154_vm15, %v1952_v50, %v1027_v29 }
0x1590   :  { %v1219_v0 = vpop.permute.xlu0 %1218 }
0x1591   :  { %v1221_v14 = vmul.f32 %v1219_v0, %v1964_v7 }
0x1593   :  { %v1222_v3 = vpack.c.bf16 %v1221_v14, %v1221_v14 }
0x1595   :  { %v1230_v4 = vsel %vm1229_vm1, %v1222_v3, %v1155_v36 }
0x1596   :  { %v1240_v8 = vunpack.c.l.b16 %v1230_v4 }
0x1598   :  { %v1241_v5 = vpack.c.b16 %v1240_v8, %v1240_v8 }
0x159a   :  { %1242 = vrot.lane.b32.xlu0 %v1241_v5, %s1565_s4 }
0x160c   :  { %v1243_v43 = vpop.permute.xlu0 %1242 }
0x160d   :  { %1432 = vmatmul.msk.bf16.vlgmr.msrb.gmra.mxu1 %vm163_vm4, %v1243_v43 }
0x168a   :  { %v1268_v48 = vpop.f32.mrf.mxu1 }
0x168b   :  { %v1269_v9 = vadd.f32 %v1462_v52, %v1268_v48 }
0x168d   :  { %v1433_v10 = vmul.f32 -1.442695, %v1269_v9 }
0x168f   :  { %1559 = vpow2.f32 %v1433_v10 }
0x1692   :  { %v1270_v12 = vpop.f32.mrf.mxu1 }
0x1695   :  { %v1560_v11 = vpop.eup %1559 }
0x1696   :  { %v1275_v50 = vadd.f32 1.0, %v1560_v11 }
0x1698   :  { %1561 = vrcp.f32 %v1275_v50  ;;  %v1287_v19 = vand.u32 2147483648, %v1275_v50  ;;  %v1285_v22 = vand.u32 2147483647, %v1275_v50  ;;  %vm1281_vm4 = vweird.f32 %v1275_v50 }
0x169a   :  { %v1288_v25 = vor.u32 1.1754944e-38, %v1287_v19  ;;  %vm1286_vm6 = vcmp.eq.f32.partialorder %v1285_v22, 8.507059e+37 }
0x169e   :  { %v1562_v13 = vpop.eup %1561 }
0x169f   :  { %v1277_v17 = vmul.f32 %v1562_v13, %v1275_v50  ;;  %vm1282_vm2 = vweird.f32 %v1562_v13 }
0x16a0   :  { %vm1283_vm3 = vmor %vm1281_vm4, %vm1282_vm2 }
0x16a1   :  { %v1278_v18 = vsub.f32 1.0, %v1277_v17 }
0x16a3   :  { %v1279_v21 = vmul.f32 %v1562_v13, %v1278_v18 }
0x16a5   :  { %v1280_v60 = vadd.f32 %v1562_v13, %v1279_v21 }
0x16a7   :  { %v1284_v26 = vsel %vm1283_vm3, %v1562_v13, %v1280_v60 }
0x16a8   :  { %v1289_v24 = vsel %vm1286_vm6, %v1288_v25, %v1284_v26 }
0x16a9   :  { %1291 = vst [vmem:[%s2009_s7] sm:$0xff] %v1289_v24 }

</bundles_post_ra>
